<compile_context>
chip_gen: v7x
topology: tpu7x:2x2x1
jax: 0.10.0
libtpu: 0.0.40
codegen_flags: <defaults>
</compile_context>

<pallas_src>
import math

import jax
import jax.numpy as jnp
from jax.experimental import pallas as pl
from jax.experimental.pallas import tpu as pltpu


def _elu(x):
    # F.elu with alpha=1.0.  exp(x)-1 instead of expm1 (a few ULPs near 0) to
    # stay on ops with guaranteed Mosaic lowerings.
    return jnp.where(x > 0, x, jnp.exp(jnp.minimum(x, 0.0)) - 1.0)


def _round_up(x, m):
    return ((x + m - 1) // m) * m


def _pad2(x, rows, cols):
    pr, pc = rows - x.shape[0], cols - x.shape[1]
    if pr or pc:
        x = jnp.pad(x, ((0, pr), (0, pc)))
    return x


def _pick_row_tile(n, cap):
    """Pick a row-tile size (multiple of 128, <= cap) minimizing padding,
    preferring the largest tile among equal paddings."""
    cands = range(128, cap + 1, 128)
    return min(cands, key=lambda t: (_round_up(n, t), -t))


def _largest_divisor_tile(n_pad, cap):
    """Largest multiple of 128 (<= cap) that divides n_pad."""
    t = 128
    for cand in range(128, cap + 1, 128):
        if n_pad % cand == 0:
            t = cand
    return t


def _vmem_limit_bytes():
    """Per-generation scoped-VMEM budget with >=16 MiB headroom."""
    try:
        cap = int(pltpu.get_tpu_info().vmem_capacity_bytes)
    except Exception:  # conservative fallback (v7x-sized)
        cap = 64 * 1024 * 1024
    return int(min(max(cap - 16 * 1024 * 1024, 32 * 1024 * 1024),
                   100 * 1024 * 1024))


def prepare_adjacency(adj, n_pad, dtype):
    """Cast + zero-pad an adjacency once; no-op if already prepared.

    Callers holding the adjacency across layers/calls should call this once
    and pass the result to robust_gcn_conv to avoid a per-call N^2 HBM pass.
    Padding columns/rows MUST be zero (jnp.pad guarantees this).
    """
    adj = jnp.asarray(adj)
    if adj.dtype != dtype:
        adj = adj.astype(dtype)          # cast first: pad then writes narrow dtype
    if adj.shape != (n_pad, n_pad):
        adj = _pad2(adj, n_pad, n_pad)
    return adj


# ----------------------------- kernels ---------------------------------------


def _init_kernel(x_ref, w_ref, b_ref, om_ref, ov_ref):
    """initial=True branch: y = x @ [Wm|Wv] + [bm|bv] in one MXU matmul
    (both linears share the same input, so column-concatenation wastes no
    flops)."""
    y = jnp.dot(x_ref[...], w_ref[...],
                preferred_element_type=jnp.float32) + b_ref[...]
    f = y.shape[1] // 2
    om_ref[...] = _elu(y[:, :f])
    ov_ref[...] = jnp.maximum(y[:, f:], 0.0)


def _transform_kernel(mean_ref, var_ref, wm_ref, wv_ref, bm_ref, bv_ref,
                      gm_ref, gv_ref):
    """Phase 1 of prop branch: two dense dots (separate resident weights) +
    activations + attention gating, one pass over node-row tiles."""
    m = _elu(jnp.dot(mean_ref[...], wm_ref[...],
                     preferred_element_type=jnp.float32) + bm_ref[...])
    v = jnp.maximum(jnp.dot(var_ref[...], wv_ref[...],
                            preferred_element_type=jnp.float32) + bv_ref[...],
                    0.0) + 1e-6
    att = jnp.exp(-v)
    gm_ref[...] = (m * att).astype(gm_ref.dtype)
    gv_ref[...] = (v * att * att).astype(gv_ref.dtype)


def _propagate_kernel(adj0_ref, adj1_ref, gm_ref, gv_ref, om_ref, ov_ref):
    """Phase 2: tiled adjacency matmuls, accumulating directly into the
    k-invariant (VMEM-resident) f32 output tiles."""
    k = pl.program_id(1)

    @pl.when(k == 0)
    def _():
        om_ref[...] = jnp.zeros_like(om_ref)
        ov_ref[...] = jnp.zeros_like(ov_ref)

    om_ref[...] += jnp.dot(adj0_ref[...], gm_ref[...],
                           preferred_element_type=jnp.float32)
    ov_ref[...] += jnp.dot(adj1_ref[...], gv_ref[...],
                           preferred_element_type=jnp.float32)


# ----------------------------- wrapper ----------------------------------------


def robust_gcn_conv(mean, var=None, adj0=None, adj1=None, params=None, *,
                    initial=False, adj_matmul_dtype=jnp.bfloat16,
                    tm=None, tk=None):
    """RobustGCNConv forward (eval mode).

    adj_matmul_dtype: dtype of the adjacency-matmul operands (adjacency tiles
      and gated features).  bfloat16 halves the dominant HBM traffic and uses
      the fast MXU path; accumulation is always float32.
    tm / tk: optional explicit phase-2 row / reduction tile sizes (multiples
      of 128).  By default they are chosen adaptively (tm up to 512, tk up to
      1024) to minimize padding.
    """
    wm, bm, wv, bv = params
    n, f_in = mean.shape
    f_out = wm.shape[1]

    f_in_pad = _round_up(f_in, 128)
    f_pad = _round_up(f_out, 128)
    vmem_limit = _vmem_limit_bytes()

    wm_p = _pad2(jnp.asarray(wm, jnp.float32), f_in_pad, f_pad)
    wv_p = _pad2(jnp.asarray(wv, jnp.float32), f_in_pad, f_pad)
    bm_p = _pad2(jnp.asarray(bm, jnp.float32).reshape(1, -1), 1, f_pad)
    bv_p = _pad2(jnp.asarray(bv, jnp.float32).reshape(1, -1), 1, f_pad)

    if initial:
        tm_init = _pick_row_tile(n, 1024)
        n_pad = _round_up(n, tm_init)
        mean_p = _pad2(jnp.asarray(mean, jnp.float32), n_pad, f_in_pad)
        w_cat = jnp.concatenate([wm_p, wv_p], axis=1)        # [F_in_pad, 2*F_pad]
        b_cat = jnp.concatenate([bm_p, bv_p], axis=1)        # [1, 2*F_pad]
        om, ov = pl.pallas_call(
            _init_kernel,
            out_shape=(jax.ShapeDtypeStruct((n_pad, f_pad), jnp.float32),
                       jax.ShapeDtypeStruct((n_pad, f_pad), jnp.float32)),
            grid_spec=pltpu.PrefetchScalarGridSpec(
                num_scalar_prefetch=0,
                grid=(n_pad // tm_init,),
                in_specs=[
                    pl.BlockSpec((tm_init, f_in_pad), lambda i: (i, 0)),
                    # Parameters: same block every step -> stay VMEM-resident.
                    pl.BlockSpec((f_in_pad, 2 * f_pad), lambda i: (0, 0)),
                    pl.BlockSpec((1, 2 * f_pad), lambda i: (0, 0)),
                ],
                out_specs=(
                    pl.BlockSpec((tm_init, f_pad), lambda i: (i, 0)),
                    pl.BlockSpec((tm_init, f_pad), lambda i: (i, 0)),
                ),
            ),
            compiler_params=pltpu.CompilerParams(
                dimension_semantics=("parallel",),
                vmem_limit_bytes=vmem_limit),
        )(mean_p, w_cat, b_cat)
        return om[:n, :f_out], ov[:n, :f_out]

    # ---------------- propagation branch -------------------------------------
    if tm is None and tk is None:
        tm = _pick_row_tile(n, 512)
        n_pad = _round_up(n, tm)
        tk = _largest_divisor_tile(n_pad, 1024)
    else:
        tm = tm or 512
        tk = tk or 1024
        n_pad = _round_up(n, math.lcm(tm, tk))
    tm1 = _largest_divisor_tile(n_pad, 1024)   # phase-1 row tile

    mean_p = _pad2(jnp.asarray(mean, jnp.float32), n_pad, f_in_pad)
    var_p = _pad2(jnp.asarray(var, jnp.float32), n_pad, f_in_pad)

    # Phase 1: two dots with resident weights + activations + attention gating,
    # one pass over node rows, lane-dense gm/gv outputs in the matmul dtype.
    gm, gv = pl.pallas_call(
        _transform_kernel,
        out_shape=(jax.ShapeDtypeStruct((n_pad, f_pad), adj_matmul_dtype),
                   jax.ShapeDtypeStruct((n_pad, f_pad), adj_matmul_dtype)),
        grid_spec=pltpu.PrefetchScalarGridSpec(
            num_scalar_prefetch=0,
            grid=(n_pad // tm1,),
            in_specs=[
                pl.BlockSpec((tm1, f_in_pad), lambda i: (i, 0)),
                pl.BlockSpec((tm1, f_in_pad), lambda i: (i, 0)),
                pl.BlockSpec((f_in_pad, f_pad), lambda i: (0, 0)),
                pl.BlockSpec((f_in_pad, f_pad), lambda i: (0, 0)),
                pl.BlockSpec((1, f_pad), lambda i: (0, 0)),
                pl.BlockSpec((1, f_pad), lambda i: (0, 0)),
            ],
            out_specs=(
                pl.BlockSpec((tm1, f_pad), lambda i: (i, 0)),
                pl.BlockSpec((tm1, f_pad), lambda i: (i, 0)),
            ),
        ),
        compiler_params=pltpu.CompilerParams(
            dimension_semantics=("parallel",),
            vmem_limit_bytes=vmem_limit),
    )(mean_p, var_p, wm_p, wv_p, bm_p, bv_p)

    # No-op if the caller already supplies (n_pad, n_pad) arrays in the right
    # dtype (pre-prepared once via prepare_adjacency and reused per layer).
    adj0_p = prepare_adjacency(adj0, n_pad, adj_matmul_dtype)
    adj1_p = prepare_adjacency(adj1, n_pad, adj_matmul_dtype)

    # Phase 2: tiled adjacency matmuls, f32 accumulation directly in the
    # k-invariant output tiles; row axis parallel (megacore/2-TC), k arbitrary.
    om, ov = pl.pallas_call(
        _propagate_kernel,
        out_shape=(jax.ShapeDtypeStruct((n_pad, f_pad), jnp.float32),
                   jax.ShapeDtypeStruct((n_pad, f_pad), jnp.float32)),
        grid_spec=pltpu.PrefetchScalarGridSpec(
            num_scalar_prefetch=0,
            grid=(n_pad // tm, n_pad // tk),
            in_specs=[
                pl.BlockSpec((tm, tk), lambda i, k: (i, k)),
                pl.BlockSpec((tm, tk), lambda i, k: (i, k)),
                pl.BlockSpec((tk, f_pad), lambda i, k: (k, 0)),
                pl.BlockSpec((tk, f_pad), lambda i, k: (k, 0)),
            ],
            out_specs=(
                pl.BlockSpec((tm, f_pad), lambda i, k: (i, 0)),
                pl.BlockSpec((tm, f_pad), lambda i, k: (i, 0)),
            ),
        ),
        compiler_params=pltpu.CompilerParams(
            dimension_semantics=("parallel", "arbitrary"),
            vmem_limit_bytes=vmem_limit),
    )(adj0_p, adj1_p, gm, gv)

    return om[:n, :f_out], ov[:n, :f_out]


# ----------------------------- reference & test --------------------------------


def _reference(mean, var, adj0, adj1, params, *, initial=False):
    """Pure-JAX reference of the PyTorch forward (eval mode)."""
    wm, bm, wv, bv = params
    if initial:
        m = _elu(mean @ wm + bm)
        v = jnp.maximum(mean @ wv + bv, 0.0)
        return m, v
    m = _elu(mean @ wm + bm)
    v = jnp.maximum(var @ wv + bv, 0.0) + 1e-6
    att = jnp.exp(-v)
    return adj0 @ (m * att), adj1 @ (v * att * att)


if __name__ == "__main__":
    # Small shapes: N nodes (not a tile multiple -> exercises padding),
    # in/out features smaller than a lane (exercises 128-lane padding).
    N, F_IN, F_OUT = 200, 32, 48

    key = jax.random.PRNGKey(0)
    k_mean, k_var, k_wm, k_bm, k_wv, k_bv, k_adj = jax.random.split(key, 7)

    mean = jax.random.normal(k_mean, (N, F_IN), dtype=jnp.float32)
    var = jax.random.normal(k_var, (N, F_IN), dtype=jnp.float32)

    bound = 1.0 / (F_IN ** 0.5)
    wm = jax.random.uniform(k_wm, (F_IN, F_OUT), jnp.float32, -bound, bound)
    bm = jax.random.uniform(k_bm, (F_OUT,), jnp.float32, -bound, bound)
    wv = jax.random.uniform(k_wv, (F_IN, F_OUT), jnp.float32, -bound, bound)
    bv = jax.random.uniform(k_bv, (F_OUT,), jnp.float32, -bound, bound)
    params = (wm, bm, wv, bv)

    # Dense row/symmetric-normalized adjacency stand-ins for torch sparse adj.
    a = jax.random.uniform(k_adj, (N, N), jnp.float32, 0.0, 1.0)
    a = (a > 0.7).astype(jnp.float32) + jnp.eye(N, dtype=jnp.float32)
    deg = jnp.sum(a, axis=1)
    adj0 = a / deg[:, None]                                # D^-1 A
    adj1 = a / jnp.sqrt(deg[:, None] * deg[None, :])       # D^-1/2 A D^-1/2

    ref_mean, ref_var = _reference(mean, var, adj0, adj1, params, initial=False)

    # Propagation branch: bf16 adjacency-matmul fast path (default).
    out_mean, out_var = robust_gcn_conv(mean, var, adj0, adj1, params,
                                        initial=False)
    jax.block_until_ready((out_mean, out_var))
    assert out_mean.shape == (N, F_OUT) and out_var.shape == (N, F_OUT)
    assert jnp.allclose(out_mean, ref_mean, atol=5e-2, rtol=5e-2)
    assert jnp.allclose(out_var, ref_var, atol=5e-2, rtol=5e-2)

    # Propagation branch: full-f32 adjacency matmul (tighter check).
    out_mean32, out_var32 = robust_gcn_conv(mean, var, adj0, adj1, params,
                                            initial=False,
                                            adj_matmul_dtype=jnp.float32)
    jax.block_until_ready((out_mean32, out_var32))
    assert jnp.allclose(out_mean32, ref_mean, atol=1e-2, rtol=1e-2)
    assert jnp.allclose(out_var32, ref_var, atol=1e-2, rtol=1e-2)

    # Initial branch.
    im, iv = robust_gcn_conv(mean, params=params, initial=True)
    jax.block_until_ready((im, iv))
    rm, rv = _reference(mean, None, None, None, params, initial=True)
    assert im.shape == (N, F_OUT) and iv.shape == (N, F_OUT)
    assert jnp.allclose(im, rm, atol=1e-2, rtol=1e-2)
    assert jnp.allclose(iv, rv, atol=1e-2, rtol=1e-2)

    print("KERNEL_OK")
</pallas_src>

<mosaic_0001>
module attributes {stable_mosaic.version = 11 : i64} {
  func.func @_transform_kernel(%arg0: i32, %arg1: memref<256x128xf32, #tpu.memory_space<vmem>>, %arg2: memref<256x128xf32, #tpu.memory_space<vmem>>, %arg3: memref<128x128xf32, #tpu.memory_space<vmem>>, %arg4: memref<128x128xf32, #tpu.memory_space<vmem>>, %arg5: memref<1x128xf32, #tpu.memory_space<vmem>>, %arg6: memref<1x128xf32, #tpu.memory_space<vmem>>, %arg7: memref<256x128xbf16, #tpu.memory_space<vmem>>, %arg8: memref<256x128xbf16, #tpu.memory_space<vmem>>) attributes {dimension_semantics = [#tpu.dimension_semantics<parallel>], iteration_bounds = array<i64: 1>, scalar_prefetch = 0 : i64, scratch_operands = 0 : i64, tpu.core_type = #tpu.core_type<tc>, window_params = [{transform_indices = @transform_0, window_bounds = array<i64: 256, 128>}, {transform_indices = @transform_1, window_bounds = array<i64: 256, 128>}, {pipeline_mode = #tpu.pipeline_mode<synchronous>, transform_indices = @transform_2, window_bounds = array<i64: 128, 128>}, {pipeline_mode = #tpu.pipeline_mode<synchronous>, transform_indices = @transform_3, window_bounds = array<i64: 128, 128>}, {pipeline_mode = #tpu.pipeline_mode<synchronous>, transform_indices = @transform_4, window_bounds = array<i64: 1, 128>}, {pipeline_mode = #tpu.pipeline_mode<synchronous>, transform_indices = @transform_5, window_bounds = array<i64: 1, 128>}, {transform_indices = @transform_6, window_bounds = array<i64: 256, 128>}, {transform_indices = @transform_7, window_bounds = array<i64: 256, 128>}]} {
    %c0 = arith.constant 0 : index
    %c0_0 = arith.constant 0 : index
    %0 = vector.load %arg1[%c0, %c0_0] : memref<256x128xf32, #tpu.memory_space<vmem>>, vector<256x128xf32>
    %c0_1 = arith.constant 0 : index
    %c0_2 = arith.constant 0 : index
    %1 = vector.load %arg3[%c0_1, %c0_2] : memref<128x128xf32, #tpu.memory_space<vmem>>, vector<128x128xf32>
    %cst = arith.constant dense<0.000000e+00> : vector<256x128xf32>
    %2 = tpu.matmul %0, %1, %cst {dimension_numbers = #tpu.dot_dimension_numbers<[1], [0], [0], [1], [0, 0, 1, 1], [], []>} : vector<256x128xf32>, vector<128x128xf32>, vector<256x128xf32> -> vector<256x128xf32>
    %c0_3 = arith.constant 0 : index
    %c0_4 = arith.constant 0 : index
    %3 = vector.load %arg5[%c0_3, %c0_4] : memref<1x128xf32, #tpu.memory_space<vmem>>, vector<1x128xf32>
    %4 = vector.broadcast %3 : vector<1x128xf32> to vector<256x128xf32>
    %5 = arith.addf %2, %4 : vector<256x128xf32>
    %cst_5 = arith.constant 0.000000e+00 : f32
    %6 = vector.broadcast %cst_5 : f32 to vector<256x128xf32>
    %7 = arith.cmpf ogt, %5, %6 : vector<256x128xf32>
    %cst_6 = arith.constant 0.000000e+00 : f32
    %8 = vector.broadcast %cst_6 : f32 to vector<256x128xf32>
    %9 = arith.minimumf %5, %8 : vector<256x128xf32>
    %10 = math.exp %9 : vector<256x128xf32>
    %cst_7 = arith.constant 1.000000e+00 : f32
    %11 = vector.broadcast %cst_7 : f32 to vector<256x128xf32>
    %12 = arith.subf %10, %11 : vector<256x128xf32>
    %13 = arith.select %7, %5, %12 : vector<256x128xi1>, vector<256x128xf32>
    %c0_8 = arith.constant 0 : index
    %c0_9 = arith.constant 0 : index
    %14 = vector.load %arg2[%c0_8, %c0_9] : memref<256x128xf32, #tpu.memory_space<vmem>>, vector<256x128xf32>
    %c0_10 = arith.constant 0 : index
    %c0_11 = arith.constant 0 : index
    %15 = vector.load %arg4[%c0_10, %c0_11] : memref<128x128xf32, #tpu.memory_space<vmem>>, vector<128x128xf32>
    %cst_12 = arith.constant dense<0.000000e+00> : vector<256x128xf32>
    %16 = tpu.matmul %14, %15, %cst_12 {dimension_numbers = #tpu.dot_dimension_numbers<[1], [0], [0], [1], [0, 0, 1, 1], [], []>} : vector<256x128xf32>, vector<128x128xf32>, vector<256x128xf32> -> vector<256x128xf32>
    %c0_13 = arith.constant 0 : index
    %c0_14 = arith.constant 0 : index
    %17 = vector.load %arg6[%c0_13, %c0_14] : memref<1x128xf32, #tpu.memory_space<vmem>>, vector<1x128xf32>
    %18 = vector.broadcast %17 : vector<1x128xf32> to vector<256x128xf32>
    %19 = arith.addf %16, %18 : vector<256x128xf32>
    %cst_15 = arith.constant 0.000000e+00 : f32
    %20 = vector.broadcast %cst_15 : f32 to vector<256x128xf32>
    %21 = arith.maximumf %19, %20 : vector<256x128xf32>
    %cst_16 = arith.constant 9.99999997E-7 : f32
    %22 = vector.broadcast %cst_16 : f32 to vector<256x128xf32>
    %23 = arith.addf %21, %22 : vector<256x128xf32>
    %cst_17 = arith.constant 0.000000e+00 : f32
    %24 = vector.broadcast %cst_17 : f32 to vector<256x128xf32>
    %25 = arith.subf %24, %23 : vector<256x128xf32>
    %26 = math.exp %25 : vector<256x128xf32>
    %27 = arith.mulf %13, %26 : vector<256x128xf32>
    %28 = arith.truncf %27 : vector<256x128xf32> to vector<256x128xbf16>
    %c0_18 = arith.constant 0 : index
    %c0_19 = arith.constant 0 : index
    %29 = vector.load %arg7[%c0_18, %c0_19] : memref<256x128xbf16, #tpu.memory_space<vmem>>, vector<256x128xbf16>
    tpu.vector_store %arg7[%c0_18, %c0_19], %28 {strides = array<i32>} : memref<256x128xbf16, #tpu.memory_space<vmem>>, vector<256x128xbf16>,
    %30 = arith.mulf %23, %26 : vector<256x128xf32>
    %31 = arith.mulf %30, %26 : vector<256x128xf32>
    %32 = arith.truncf %31 : vector<256x128xf32> to vector<256x128xbf16>
    %c0_20 = arith.constant 0 : index
    %c0_21 = arith.constant 0 : index
    %33 = vector.load %arg8[%c0_20, %c0_21] : memref<256x128xbf16, #tpu.memory_space<vmem>>, vector<256x128xbf16>
    tpu.vector_store %arg8[%c0_20, %c0_21], %32 {strides = array<i32>} : memref<256x128xbf16, #tpu.memory_space<vmem>>, vector<256x128xbf16>,
    return
  }
  func.func @transform_0(%arg0: i32) -> (i32, i32) {
    %c0_i32 = arith.constant 0 : i32
    %c0_i32_0 = arith.constant 0 : i32
    return %arg0, %c0_i32 : i32, i32
  }
  func.func @transform_1(%arg0: i32) -> (i32, i32) {
    %c0_i32 = arith.constant 0 : i32
    %c0_i32_0 = arith.constant 0 : i32
    return %arg0, %c0_i32 : i32, i32
  }
  func.func @transform_2(%arg0: i32) -> (i32, i32) {
    %c0_i32 = arith.constant 0 : i32
    %c0_i32_0 = arith.constant 0 : i32
    %c0_i32_1 = arith.constant 0 : i32
    return %c0_i32, %c0_i32_0 : i32, i32
  }
  func.func @transform_3(%arg0: i32) -> (i32, i32) {
    %c0_i32 = arith.constant 0 : i32
    %c0_i32_0 = arith.constant 0 : i32
    %c0_i32_1 = arith.constant 0 : i32
    return %c0_i32, %c0_i32_0 : i32, i32
  }
  func.func @transform_4(%arg0: i32) -> (i32, i32) {
    %c0_i32 = arith.constant 0 : i32
    %c0_i32_0 = arith.constant 0 : i32
    %c0_i32_1 = arith.constant 0 : i32
    return %c0_i32, %c0_i32_0 : i32, i32
  }
  func.func @transform_5(%arg0: i32) -> (i32, i32) {
    %c0_i32 = arith.constant 0 : i32
    %c0_i32_0 = arith.constant 0 : i32
    %c0_i32_1 = arith.constant 0 : i32
    return %c0_i32, %c0_i32_0 : i32, i32
  }
  func.func @transform_6(%arg0: i32) -> (i32, i32) {
    %c0_i32 = arith.constant 0 : i32
    %c0_i32_0 = arith.constant 0 : i32
    return %arg0, %c0_i32 : i32, i32
  }
  func.func @transform_7(%arg0: i32) -> (i32, i32) {
    %c0_i32 = arith.constant 0 : i32
    %c0_i32_0 = arith.constant 0 : i32
    return %arg0, %c0_i32 : i32, i32
  }
}

</mosaic_0001>

<bundles_post_ra>
// kernel: tpu_custom_call.1
= control target key start
LH: loop header
LB: loop body
LE: loop exit
PB: predicated region body
PF: predicated region fallthrough
CT: control target
= control target key end

     0   :  { %13 = vsyncpa [#allocation3], 0  ;;  %s3102_s0 = inlined_call_operand.hbm [shape: f32[256,128], index: 0, kind: input, shape index: {}]   ;;  %s3103_s1 = inlined_call_operand.hbm [shape: f32[256,128], index: 1, kind: input, shape index: {}]   ;;  %s3104_s2 = inlined_call_operand.hbm [shape: f32[128,128], index: 2, kind: input, shape index: {}]   ;;  %s3105_s3 = inlined_call_operand.hbm [shape: f32[128,128], index: 3, kind: input, shape index: {}]   ;;  %s3106_s4 = inlined_call_operand.vmem [shape: f32[1,128], index: 4, kind: input, shape index: {}]   ;;  %s3107_s5 = inlined_call_operand.vmem [shape: f32[1,128], index: 5, kind: input, shape index: {}]   ;;  %s3108_s6 = inlined_call_operand.hbm [shape: bf16[256,128], index: 6, kind: output, shape index: {0}]   ;;  %s3109_s7 = inlined_call_operand.hbm [shape: bf16[256,128], index: 7, kind: output, shape index: {1}]  }
   0x1   :  { %14 = vsyncpa [#allocation6], 0 }
   0x2   :  { %15 = vsyncpa [#allocation9], 0 }
   0x3   :  { %16 = vsyncpa [#allocation4], 0 }
   0x4   :  { %17 = vsyncpa [#allocation12], 0  ;;  %s2399_s24 = smov [#allocation5]   ;;  %s2400_s26 = smov [#allocation2]  }
   0x5   :  { %s35_s25 = sshll.u32 %s2399_s24, 4  ;;  %s23_s27 = sshll.u32 %s2400_s26, 4  ;;  %s36_s25 = int_to_ptr.vmem [resolvable:$true] %s35_s25  ;;  %s2449_s27 = int_to_ptr.vmem [resolvable:$true] %s23_s27 }
   0x6   :  { %s2257_s30 = scalar_lea.hbm %s3103_s1, 4096 }
   0x7   :  { %p2258_p0 = scmp.ne.s32.totalorder %s3103_s1, %s2257_s30  ;;  %p2261_p1 = scmp.lt.u32.totalorder %s2257_s30, %s3103_s1 }
   0x9   :  { %p2263_p2 = pnand %p2261_p1, %p2258_p0 }
   0xb   :  { %2266 = shalt.err (!%p2263_p2)
}
   0xc   :  { %s2267_s12 = scalar_lea.vmem %s36_s25, 4096  ;;  %p2272_p4 = scmp.lt.s32.totalorder %s36_s25, %s36_s25 }
   0xd   :  { %p2268_p3 = scmp.ne.s32.totalorder %s36_s25, %s2267_s12  ;;  %p2273_p5 = scmp.lt.s32.totalorder %s2267_s12, %s2267_s12 }
   0xf   :  { %p2274_p6 = por %p2273_p5, %p2272_p4 }
  0x11   :  { %p2275_p7 = pnand %p2274_p6, %p2268_p3 }
  0x13   :  { %2278 = shalt.err (!%p2275_p7)
}
  0x14   :  { %s2401_s13 = smov 128   ;;  %s2402_s14 = smov 8  }
  0x15   :  { %41 = dma.hbm_to_vmem [thread:$0]  %s3103_s1, 4096, %s36_s25, [#allocation6], %s2401_s13, %s2401_s13, %s2402_s14  }
  0x16   :  { %s2279_s19 = scalar_lea.hbm %s3102_s0, 4096 }
  0x17   :  { %p2280_p8 = scmp.ne.s32.totalorder %s3102_s0, %s2279_s19  ;;  %p2283_p9 = scmp.lt.u32.totalorder %s2279_s19, %s3102_s0 }
  0x19   :  { %p2285_p10 = pnand %p2283_p9, %p2280_p8 }
  0x1b   :  { %2288 = shalt.err (!%p2285_p10)
}
  0x1c   :  { %s2289_s24 = scalar_lea.vmem %s2449_s27, 4096  ;;  %p2294_p12 = scmp.lt.s32.totalorder %s2449_s27, %s2449_s27 }
  0x1d   :  { %p2290_p11 = scmp.ne.s32.totalorder %s2449_s27, %s2289_s24  ;;  %p2295_p13 = scmp.lt.s32.totalorder %s2289_s24, %s2289_s24 }
  0x1f   :  { %p2296_p0 = por %p2295_p13, %p2294_p12 }
  0x21   :  { %p2297_p1 = pnand %p2296_p0, %p2290_p11 }
  0x23   :  { %2300 = shalt.err (!%p2297_p1)
}
  0x24   :  { %29 = dma.hbm_to_vmem [thread:$0]  %s3102_s0, 4096, %s2449_s27, [#allocation3], %s2401_s13, %s2401_s13, %s2402_s14  }
  0x25   :  { %s2403_s26 = smov [#allocation7]   ;;  %s2404_s29 = smov [#allocation8]  }
  0x26   :  { %s47_s28 = sshll.u32 %s2403_s26, 4  ;;  %s59_s30 = sshll.u32 %s2404_s29, 4  ;;  %s48_s28 = int_to_ptr.vmem [resolvable:$true] %s47_s28  ;;  %s2486_s30 = int_to_ptr.vmem [resolvable:$true] %s59_s30 }
  0x27   :  { %s2301_s10 = scalar_lea.hbm %s3104_s2, 2048 }
  0x28   :  { %p2302_p2 = scmp.ne.s32.totalorder %s3104_s2, %s2301_s10  ;;  %p2305_p3 = scmp.lt.u32.totalorder %s2301_s10, %s3104_s2 }
  0x2a   :  { %p2307_p4 = pnand %p2305_p3, %p2302_p2 }
  0x2c   :  { %2310 = shalt.err (!%p2307_p4)
}
  0x2d   :  { %s2311_s0 = scalar_lea.vmem %s48_s28, 2048  ;;  %p2316_p6 = scmp.lt.s32.totalorder %s48_s28, %s48_s28 }
  0x2e   :  { %p2312_p5 = scmp.ne.s32.totalorder %s48_s28, %s2311_s0  ;;  %p2317_p7 = scmp.lt.s32.totalorder %s2311_s0, %s2311_s0 }
  0x30   :  { %p2318_p8 = por %p2317_p7, %p2316_p6 }
  0x32   :  { %p2319_p9 = pnand %p2318_p8, %p2312_p5 }
  0x34   :  { %2322 = shalt.err (!%p2319_p9)
}
  0x35   :  { %53 = dma.hbm_to_vmem [thread:$0]  %s3104_s2, 2048, %s48_s28, [#allocation6], %s2401_s13, %s2401_s13, %s2402_s14  }
  0x36   :  { %s2323_s20 = scalar_lea.hbm %s3105_s3, 2048 }
  0x37   :  { %p2324_p10 = scmp.ne.s32.totalorder %s3105_s3, %s2323_s20  ;;  %p2327_p11 = scmp.lt.u32.totalorder %s2323_s20, %s3105_s3 }
  0x39   :  { %p2329_p12 = pnand %p2327_p11, %p2324_p10 }
  0x3b   :  { %2332 = shalt.err (!%p2329_p12)
}
  0x3c   :  { %s2333_s1 = scalar_lea.vmem %s2486_s30, 2048  ;;  %p2338_p0 = scmp.lt.s32.totalorder %s2486_s30, %s2486_s30 }
  0x3d   :  { %p2334_p13 = scmp.ne.s32.totalorder %s2486_s30, %s2333_s1  ;;  %p2339_p1 = scmp.lt.s32.totalorder %s2333_s1, %s2333_s1 }
  0x3f   :  { %p2340_p2 = por %p2339_p1, %p2338_p0 }
  0x41   :  { %p2341_p3 = pnand %p2340_p2, %p2334_p13 }
  0x43   :  { %2344 = shalt.err (!%p2341_p3)
}
  0x44   :  { %65 = dma.hbm_to_vmem [thread:$0]  %s3105_s3, 2048, %s2486_s30, [#allocation9], %s2401_s13, %s2401_s13, %s2402_s14  }
  0x45   :  { %2389 = dma.done.wait [#allocation3], 4096  }
  0x46   :  { %2390 = vsyncadd [#allocation3], 4294963200 }
  0x47   :  { %2391 = dma.done.wait [#allocation6], 6144  }
  0x48   :  { %2392 = vsyncadd [#allocation6], 4294961152 }
  0x49   :  { %2393 = dma.done.wait [#allocation9], 2048  }
  0x4a   :  { %2394 = vsyncadd [#allocation9], 4294965248  ;;  %v114_v0 = vld [vmem:[#allocation7] sm:$0xff]  ;;  %v115_v1 = vld [vmem:[#allocation7 + $0x8] sm:$0xff]  ;;  %s2406_s9 = smov [#allocation11]  }
  0x4b   :  { %v586_v2 = vld [vmem:[#allocation8] sm:$0xff]  ;;  %v2053_v3 = vpack.c.bf16 %v115_v1, %v114_v0  ;;  %v587_v4 = vld [vmem:[#allocation8 + $0x8] sm:$0xff]  ;;  %v116_v5 = vld [vmem:[#allocation7 + $0x10] sm:$0xff]  ;;  %s1427_s10 = sshll.u32 %s2406_s9, 4  ;;  %s3071_s10 = int_to_ptr.vmem [resolvable:$true] %s1427_s10 }
  0x4c   :  { %v117_v6 = vld [vmem:[#allocation7 + $0x18] sm:$0xff]  ;;  %v2085_v7 = vpack.c.bf16 %v587_v4, %v586_v2  ;;  %v588_v9 = vld [vmem:[#allocation8 + $0x10] sm:$0xff]  ;;  %v118_v11 = vld [vmem:[#allocation7 + $0x20] sm:$0xff] }
  0x4d   :  { %v2057_v8 = vpack.c.bf16 %v117_v6, %v116_v5  ;;  %v589_v10 = vld [vmem:[#allocation8 + $0x18] sm:$0xff]  ;;  %2054 = vmatprep.subr.bf16.mxu0 %v2053_v3  ;;  %v119_v13 = vld [vmem:[#allocation7 + $0x28] sm:$0xff]  ;;  %v590_v14 = vld [vmem:[#allocation8 + $0x20] sm:$0xff] }
  0x4e   :  { %v2089_v12 = vpack.c.bf16 %v589_v10, %v588_v9  ;;  %v591_v15 = vld [vmem:[#allocation8 + $0x28] sm:$0xff]  ;;  %2086 = vmatprep.subr.bf16.mxu1 %v2085_v7  ;;  %2056 = vmatpush3.bf16.msra.mxu0 %v2053_v3  ;;  %v2061_v16 = vpack.c.bf16 %v119_v13, %v118_v11  ;;  %v120_v18 = vld [vmem:[#allocation7 + $0x30] sm:$0xff]  ;;  %v121_v19 = vld [vmem:[#allocation7 + $0x38] sm:$0xff] }
  0x4f   :  { %2088 = vmatpush3.bf16.msra.mxu1 %v2085_v7  ;;  %2058 = vmatprep.subr.bf16.mxu0 %v2057_v8  ;;  %v2093_v17 = vpack.c.bf16 %v591_v15, %v590_v14  ;;  %v592_v20 = vld [vmem:[#allocation8 + $0x30] sm:$0xff]  ;;  %v593_v21 = vld [vmem:[#allocation8 + $0x38] sm:$0xff]  ;;  %v2065_v22 = vpack.c.bf16 %v121_v19, %v120_v18  ;;  %v122_v24 = vld [vmem:[#allocation7 + $0x40] sm:$0xff] }
  0x50   :  { %2090 = vmatprep.subr.bf16.mxu1 %v2089_v12  ;;  %v2097_v23 = vpack.c.bf16 %v593_v21, %v592_v20  ;;  %v123_v25 = vld [vmem:[#allocation7 + $0x48] sm:$0xff]  ;;  %v82_v26 = vld [vmem:[#allocation2] sm:$0xff]  ;;  %v124_v32 = vld [vmem:[#allocation7 + $0x50] sm:$0xff] }
  0x51   :  { %v594_v27 = vld [vmem:[#allocation8 + $0x40] sm:$0xff]  ;;  %v595_v28 = vld [vmem:[#allocation8 + $0x48] sm:$0xff]  ;;  %1925 = vmatprep.mubr.f32.mxu0 %v82_v26  ;;  %v2069_v30 = vpack.c.bf16 %v123_v25, %v122_v24  ;;  %v125_v33 = vld [vmem:[#allocation7 + $0x58] sm:$0xff] }
  0x52   :  { %2060 = vmatpush3.bf16.msra.mxu0 %v2057_v8  ;;  %v554_v29 = vld [vmem:[#allocation5] sm:$0xff]  ;;  %v2101_v31 = vpack.c.bf16 %v595_v28, %v594_v27  ;;  %v596_v34 = vld [vmem:[#allocation8 + $0x50] sm:$0xff]  ;;  %v597_v35 = vld [vmem:[#allocation8 + $0x58] sm:$0xff]  ;;  %v2073_v36 = vpack.c.bf16 %v125_v33, %v124_v32 }
  0x53   :  { %2092 = vmatpush3.bf16.msra.mxu1 %v2089_v12  ;;  %2062 = vmatprep.subr.bf16.mxu0 %v2061_v16  ;;  %v2105_v37 = vpack.c.bf16 %v597_v35, %v596_v34  ;;  %v126_v38 = vld [vmem:[#allocation7 + $0x60] sm:$0xff]  ;;  %v127_v39 = vld [vmem:[#allocation7 + $0x68] sm:$0xff]  ;;  %v128_v44 = vld [vmem:[#allocation7 + $0x70] sm:$0xff] }
  0x54   :  { %2094 = vmatprep.subr.bf16.mxu1 %v2093_v17  ;;  %2005 = vmatprep.mubr.f32.mxu1 %v554_v29  ;;  %v598_v40 = vld [vmem:[#allocation8 + $0x60] sm:$0xff]  ;;  %v599_v41 = vld [vmem:[#allocation8 + $0x68] sm:$0xff]  ;;  %v2077_v42 = vpack.c.bf16 %v127_v39, %v126_v38  ;;  %v129_v45 = vld [vmem:[#allocation7 + $0x78] sm:$0xff] }
  0x55   :  { %v2109_v43 = vpack.c.bf16 %v599_v41, %v598_v40  ;;  %v600_v46 = vld [vmem:[#allocation8 + $0x70] sm:$0xff]  ;;  %v601_v47 = vld [vmem:[#allocation8 + $0x78] sm:$0xff]  ;;  %v2081_v48 = vpack.c.bf16 %v129_v45, %v128_v44  ;;  %v83_v50 = vld [vmem:[#allocation2 + $0x8] sm:$0xff] }
  0x56   :  { %2064 = vmatpush3.bf16.msra.mxu0 %v2061_v16  ;;  %v2113_v49 = vpack.c.bf16 %v601_v47, %v600_v46  ;;  %v555_v51 = vld [vmem:[#allocation5 + $0x8] sm:$0xff]  ;;  %v84_v52 = vld [vmem:[#allocation2 + $0x10] sm:$0xff]  ;;  %v85_v54 = vld [vmem:[#allocation2 + $0x18] sm:$0xff] }
  0x57   :  { %2096 = vmatpush3.bf16.msra.mxu1 %v2093_v17  ;;  %2066 = vmatprep.subr.bf16.mxu0 %v2065_v22  ;;  %v556_v53 = vld [vmem:[#allocation5 + $0x10] sm:$0xff]  ;;  %v557_v55 = vld [vmem:[#allocation5 + $0x18] sm:$0xff]  ;;  %v86_v56 = vld [vmem:[#allocation2 + $0x20] sm:$0xff] }
  0x58   :  { %2098 = vmatprep.subr.bf16.mxu1 %v2097_v23  ;;  %v558_v57 = vld [vmem:[#allocation5 + $0x20] sm:$0xff]  ;;  %v87_v58 = vld [vmem:[#allocation2 + $0x28] sm:$0xff]  ;;  %v88_v60 = vld [vmem:[#allocation2 + $0x30] sm:$0xff] }
  0x59   :  { %v559_v59 = vld [vmem:[#allocation5 + $0x28] sm:$0xff]  ;;  %v560_v61 = vld [vmem:[#allocation5 + $0x30] sm:$0xff]  ;;  %v89_v62 = vld [vmem:[#allocation2 + $0x38] sm:$0xff] }
  0x5a   :  { %2068 = vmatpush3.bf16.msra.mxu0 %v2065_v22  ;;  %v561_v63 = vld [vmem:[#allocation5 + $0x38] sm:$0xff]  ;;  %v90_v0 = vld [vmem:[#allocation2 + $0x40] sm:$0xff]  ;;  %v91_v2 = vld [vmem:[#allocation2 + $0x48] sm:$0xff] }
  0x5b   :  { %2100 = vmatpush3.bf16.msra.mxu1 %v2097_v23  ;;  %2070 = vmatprep.subr.bf16.mxu0 %v2069_v30  ;;  %v562_v1 = vld [vmem:[#allocation5 + $0x40] sm:$0xff]  ;;  %v563_v3 = vld [vmem:[#allocation5 + $0x48] sm:$0xff]  ;;  %v92_v4 = vld [vmem:[#allocation2 + $0x50] sm:$0xff] }
  0x5c   :  { %2102 = vmatprep.subr.bf16.mxu1 %v2101_v31  ;;  %v564_v5 = vld [vmem:[#allocation5 + $0x50] sm:$0xff]  ;;  %v93_v6 = vld [vmem:[#allocation2 + $0x58] sm:$0xff]  ;;  %v94_v8 = vld [vmem:[#allocation2 + $0x60] sm:$0xff] }
  0x5d   :  { %v565_v7 = vld [vmem:[#allocation5 + $0x58] sm:$0xff]  ;;  %v566_v9 = vld [vmem:[#allocation5 + $0x60] sm:$0xff]  ;;  %v95_v10 = vld [vmem:[#allocation2 + $0x68] sm:$0xff] }
  0x5e   :  { %2072 = vmatpush3.bf16.msra.mxu0 %v2069_v30  ;;  %v567_v11 = vld [vmem:[#allocation5 + $0x68] sm:$0xff]  ;;  %v96_v12 = vld [vmem:[#allocation2 + $0x70] sm:$0xff]  ;;  %v97_v14 = vld [vmem:[#allocation2 + $0x78] sm:$0xff] }
  0x5f   :  { %2104 = vmatpush3.bf16.msra.mxu1 %v2101_v31  ;;  %2074 = vmatprep.subr.bf16.mxu0 %v2073_v36  ;;  %v568_v13 = vld [vmem:[#allocation5 + $0x70] sm:$0xff]  ;;  %v569_v15 = vld [vmem:[#allocation5 + $0x78] sm:$0xff]  ;;  %v98_v16 = vld [vmem:[#allocation2 + $0x80] sm:$0xff] }
  0x60   :  { %2106 = vmatprep.subr.bf16.mxu1 %v2105_v37  ;;  %v570_v17 = vld [vmem:[#allocation5 + $0x80] sm:$0xff]  ;;  %v99_v18 = vld [vmem:[#allocation2 + $0x88] sm:$0xff]  ;;  %v100_v20 = vld [vmem:[#allocation2 + $0x90] sm:$0xff] }
  0x61   :  { %v571_v19 = vld [vmem:[#allocation5 + $0x88] sm:$0xff]  ;;  %v572_v21 = vld [vmem:[#allocation5 + $0x90] sm:$0xff]  ;;  %v101_v22 = vld [vmem:[#allocation2 + $0x98] sm:$0xff] }
  0x62   :  { %2076 = vmatpush3.bf16.msra.mxu0 %v2073_v36  ;;  %v573_v23 = vld [vmem:[#allocation5 + $0x98] sm:$0xff]  ;;  %v102_v24 = vld [vmem:[#allocation2 + $0xa0] sm:$0xff]  ;;  %v103_v26 = vld [vmem:[#allocation2 + $0xa8] sm:$0xff] }
  0x63   :  { %2108 = vmatpush3.bf16.msra.mxu1 %v2105_v37  ;;  %2078 = vmatprep.subr.bf16.mxu0 %v2077_v42  ;;  %v574_v25 = vld [vmem:[#allocation5 + $0xa0] sm:$0xff]  ;;  %v575_v27 = vld [vmem:[#allocation5 + $0xa8] sm:$0xff]  ;;  %v104_v28 = vld [vmem:[#allocation2 + $0xb0] sm:$0xff] }
  0x64   :  { %2110 = vmatprep.subr.bf16.mxu1 %v2109_v43  ;;  %v576_v29 = vld [vmem:[#allocation5 + $0xb0] sm:$0xff]  ;;  %v105_v30 = vld [vmem:[#allocation2 + $0xb8] sm:$0xff]  ;;  %v106_v32 = vld [vmem:[#allocation2 + $0xc0] sm:$0xff] }
  0x65   :  { %v577_v31 = vld [vmem:[#allocation5 + $0xb8] sm:$0xff]  ;;  %v578_v33 = vld [vmem:[#allocation5 + $0xc0] sm:$0xff]  ;;  %v107_v34 = vld [vmem:[#allocation2 + $0xc8] sm:$0xff] }
  0x66   :  { %2080 = vmatpush3.bf16.msra.mxu0 %v2077_v42  ;;  %v579_v35 = vld [vmem:[#allocation5 + $0xc8] sm:$0xff]  ;;  %v108_v36 = vld [vmem:[#allocation2 + $0xd0] sm:$0xff]  ;;  %v109_v38 = vld [vmem:[#allocation2 + $0xd8] sm:$0xff] }
  0x67   :  { %2112 = vmatpush3.bf16.msra.mxu1 %v2109_v43  ;;  %2082 = vmatprep.subr.bf16.mxu0 %v2081_v48  ;;  %v580_v37 = vld [vmem:[#allocation5 + $0xd0] sm:$0xff]  ;;  %v581_v39 = vld [vmem:[#allocation5 + $0xd8] sm:$0xff]  ;;  %v110_v40 = vld [vmem:[#allocation2 + $0xe0] sm:$0xff] }
  0x68   :  { %2114 = vmatprep.subr.bf16.mxu1 %v2113_v49  ;;  %v582_v41 = vld [vmem:[#allocation5 + $0xe0] sm:$0xff]  ;;  %v111_v42 = vld [vmem:[#allocation2 + $0xe8] sm:$0xff]  ;;  %v112_v44 = vld [vmem:[#allocation2 + $0xf0] sm:$0xff] }
  0x69   :  { %v583_v43 = vld [vmem:[#allocation5 + $0xe8] sm:$0xff]  ;;  %v584_v45 = vld [vmem:[#allocation5 + $0xf0] sm:$0xff]  ;;  %v113_v46 = vld [vmem:[#allocation2 + $0xf8] sm:$0xff] }
  0x6a   :  { %2084 = vmatpush3.bf16.msra.mxu0 %v2081_v48  ;;  %v585_v47 = vld [vmem:[#allocation5 + $0xf8] sm:$0xff]  ;;  %v2526_v48 = vld [vmem:[%s3106_s4] ss:$0 sm:$0xff] }
  0x6b   :  { %2116 = vmatpush3.bf16.msra.mxu1 %v2113_v49  ;;  %v2531_v49 = vld [vmem:[%s3107_s5] ss:$0 sm:$0xff] }
  0x6d   :  { %1926 = vmatmul.mubr.f32.vlgmr.msra.gmra.mrb[0].mxu0 %v83_v50 }
  0x6e   :  { %2006 = vmatmul.mubr.f32.vlgmr.msra.gmra.mrb[0].mxu1 %v555_v51  ;;  %1928 = vmatprep.mubr.f32.mxu0 %v84_v52 }
  0x6f   :  { %2008 = vmatprep.mubr.f32.mxu1 %v556_v53 }
  0x71   :  { %1929 = vmatmul.mubr.f32.gmra.mrb[2].mxu0 %v85_v54 }
  0x72   :  { %2009 = vmatmul.mubr.f32.gmra.mrb[2].mxu1 %v557_v55  ;;  %1931 = vmatprep.mubr.f32.mxu0 %v86_v56 }
  0x73   :  { %2011 = vmatprep.mubr.f32.mxu1 %v558_v57 }
  0x75   :  { %1932 = vmatmul.mubr.f32.gmra.mrb[4].mxu0 %v87_v58 }
  0x76   :  { %2012 = vmatmul.mubr.f32.gmra.mrb[4].mxu1 %v559_v59  ;;  %1934 = vmatprep.mubr.f32.mxu0 %v88_v60 }
  0x77   :  { %2014 = vmatprep.mubr.f32.mxu1 %v560_v61 }
  0x79   :  { %1935 = vmatmul.mubr.f32.gmra.mrb[6].mxu0 %v89_v62 }
  0x7a   :  { %2015 = vmatmul.mubr.f32.gmra.mrb[6].mxu1 %v561_v63  ;;  %1937 = vmatprep.mubr.f32.mxu0 %v90_v0 }
  0x7b   :  { %2017 = vmatprep.mubr.f32.mxu1 %v562_v1 }
  0x7d   :  { %1938 = vmatmul.mubr.f32.gmra.mrb[8].mxu0 %v91_v2 }
  0x7e   :  { %2018 = vmatmul.mubr.f32.gmra.mrb[8].mxu1 %v563_v3  ;;  %1940 = vmatprep.mubr.f32.mxu0 %v92_v4 }
  0x7f   :  { %2020 = vmatprep.mubr.f32.mxu1 %v564_v5 }
  0x81   :  { %1941 = vmatmul.mubr.f32.gmra.mrb[10].mxu0 %v93_v6 }
  0x82   :  { %2021 = vmatmul.mubr.f32.gmra.mrb[10].mxu1 %v565_v7  ;;  %1943 = vmatprep.mubr.f32.mxu0 %v94_v8 }
  0x83   :  { %2023 = vmatprep.mubr.f32.mxu1 %v566_v9 }
  0x85   :  { %1944 = vmatmul.mubr.f32.gmra.mrb[12].mxu0 %v95_v10 }
  0x86   :  { %2024 = vmatmul.mubr.f32.gmra.mrb[12].mxu1 %v567_v11  ;;  %1946 = vmatprep.mubr.f32.mxu0 %v96_v12 }
  0x87   :  { %2026 = vmatprep.mubr.f32.mxu1 %v568_v13 }
  0x89   :  { %1947 = vmatmul.mubr.f32.gmra.mrb[14].mxu0 %v97_v14 }
  0x8a   :  { %2027 = vmatmul.mubr.f32.gmra.mrb[14].mxu1 %v569_v15  ;;  %1949 = vmatprep.mubr.f32.mxu0 %v98_v16 }
  0x8b   :  { %2029 = vmatprep.mubr.f32.mxu1 %v570_v17 }
  0x8d   :  { %1950 = vmatmul.mubr.f32.gmra.mrb[16].mxu0 %v99_v18 }
  0x8e   :  { %2030 = vmatmul.mubr.f32.gmra.mrb[16].mxu1 %v571_v19  ;;  %1952 = vmatprep.mubr.f32.mxu0 %v100_v20 }
  0x8f   :  { %2032 = vmatprep.mubr.f32.mxu1 %v572_v21 }
  0x91   :  { %1953 = vmatmul.mubr.f32.gmra.mrb[18].mxu0 %v101_v22 }
  0x92   :  { %2033 = vmatmul.mubr.f32.gmra.mrb[18].mxu1 %v573_v23  ;;  %1955 = vmatprep.mubr.f32.mxu0 %v102_v24 }
  0x93   :  { %2035 = vmatprep.mubr.f32.mxu1 %v574_v25 }
  0x95   :  { %1956 = vmatmul.mubr.f32.gmra.mrb[20].mxu0 %v103_v26 }
  0x96   :  { %2036 = vmatmul.mubr.f32.gmra.mrb[20].mxu1 %v575_v27  ;;  %1958 = vmatprep.mubr.f32.mxu0 %v104_v28 }
  0x97   :  { %2038 = vmatprep.mubr.f32.mxu1 %v576_v29 }
  0x99   :  { %1959 = vmatmul.mubr.f32.gmra.mrb[22].mxu0 %v105_v30 }
  0x9a   :  { %2039 = vmatmul.mubr.f32.gmra.mrb[22].mxu1 %v577_v31  ;;  %1961 = vmatprep.mubr.f32.mxu0 %v106_v32 }
  0x9b   :  { %2041 = vmatprep.mubr.f32.mxu1 %v578_v33 }
  0x9d   :  { %1962 = vmatmul.mubr.f32.gmra.mrb[24].mxu0 %v107_v34 }
  0x9e   :  { %2042 = vmatmul.mubr.f32.gmra.mrb[24].mxu1 %v579_v35  ;;  %1964 = vmatprep.mubr.f32.mxu0 %v108_v36 }
  0x9f   :  { %2044 = vmatprep.mubr.f32.mxu1 %v580_v37 }
  0xa1   :  { %1965 = vmatmul.mubr.f32.gmra.mrb[26].mxu0 %v109_v38 }
  0xa2   :  { %2045 = vmatmul.mubr.f32.gmra.mrb[26].mxu1 %v581_v39  ;;  %1967 = vmatprep.mubr.f32.mxu0 %v110_v40 }
  0xa3   :  { %2047 = vmatprep.mubr.f32.mxu1 %v582_v41 }
  0xa5   :  { %1968 = vmatmul.mubr.f32.gmra.mrb[28].mxu0 %v111_v42 }
  0xa6   :  { %2048 = vmatmul.mubr.f32.gmra.mrb[28].mxu1 %v583_v43  ;;  %1970 = vmatprep.mubr.f32.mxu0 %v112_v44 }
  0xa7   :  { %2050 = vmatprep.mubr.f32.mxu1 %v584_v45 }
  0xa9   :  { %1971 = vmatmul.mubr.f32.gmra.mrb[30].mxu0 %v113_v46 }
  0xaa   :  { %2051 = vmatmul.mubr.f32.gmra.mrb[30].mxu1 %v585_v47 }
 0x140   :  { %v1927_v50 = vpop.f32.mrb[0].mxu0 }
 0x141   :  { %v2534_v51 = vadd.f32 %v1927_v50, %v2526_v48  ;;  %v2007_v52 = vpop.f32.mrb[0].mxu1  ;;  %v203_v53 = vpop.f32.mrb[1].mxu0 }
 0x142   :  { %v681_v54 = vadd.f32 %v2007_v52, %v2531_v49  ;;  %v2538_v55 = vadd.f32 %v2526_v48, %v203_v53  ;;  %v675_v56 = vpop.f32.mrb[1].mxu1 }
 0x143   :  { %v395_v57 = vmin.f32 %v2534_v51, 0.0  ;;  %v676_v58 = vadd.f32 %v2531_v49, %v675_v56  ;;  %vm363_vm0 = vcmp.gt.f32.partialorder %v2534_v51, 0.0 }
 0x144   :  { %v835_v59 = vmax.f32 %v681_v54, 0.0  ;;  %v394_v60 = vmin.f32 %v2538_v55, 0.0  ;;  %v1930_v61 = vpop.f32.mrb[2].mxu0  ;;  %vm362_vm1 = vcmp.gt.f32.partialorder %v2538_v55, 0.0 }
 0x145   :  { %v428_v62 = vmul.f32 1.442695, %v395_v57  ;;  %v834_v63 = vmax.f32 %v676_v58, 0.0  ;;  %v2544_v0 = vadd.f32 %v1930_v61, %v2526_v48  ;;  %v2010_v1 = vpop.f32.mrb[2].mxu1  ;;  %v213_v2 = vpop.f32.mrb[3].mxu0 }
 0x146   :  { %v2546_v3 = vadd.f32 1e-06, %v835_v59  ;;  %v426_v4 = vmul.f32 1.442695, %v394_v60  ;;  %v691_v5 = vadd.f32 %v2010_v1, %v2531_v49  ;;  %v2550_v6 = vadd.f32 %v2526_v48, %v213_v2  ;;  %v685_v7 = vpop.f32.mrb[3].mxu1 }
 0x147   :  { %2127 = vpow2.f32 %v428_v62  ;;  %v2552_v8 = vadd.f32 1e-06, %v834_v63  ;;  %v397_v9 = vmin.f32 %v2544_v0, 0.0  ;;  %v686_v16 = vadd.f32 %v2531_v49, %v685_v7 }
 0x148   :  { %v899_v10 = vsub.f32 0.0, %v2546_v3  ;;  %2129 = vpow2.f32 %v426_v4  ;;  %v837_v11 = vmax.f32 %v691_v5, 0.0  ;;  %v1933_v12 = vpop.f32.mrb[4].mxu0  ;;  %v396_v15 = vmin.f32 %v2550_v6, 0.0 }
 0x149   :  { %v898_v13 = vsub.f32 0.0, %v2552_v8  ;;  %v432_v14 = vmul.f32 1.442695, %v397_v9  ;;  %v2013_v17 = vpop.f32.mrb[4].mxu1  ;;  %v223_v18 = vpop.f32.mrb[5].mxu0  ;;  %v2562_v21 = vadd.f32 %v1933_v12, %v2526_v48  ;;  %v836_v26 = vmax.f32 %v686_v16, 0.0 }
 0x14a   :  { %v932_v19 = vmul.f32 1.442695, %v899_v10  ;;  %v2559_v20 = vadd.f32 1e-06, %v837_v11  ;;  %v701_v22 = vadd.f32 %v2013_v17, %v2531_v49  ;;  %v695_v23 = vpop.f32.mrb[5].mxu1  ;;  %v2572_v32 = vadd.f32 %v2526_v48, %v223_v18 }
 0x14b   :  { %v930_v24 = vmul.f32 1.442695, %v898_v13  ;;  %2131 = vpow2.f32 %v432_v14  ;;  %v430_v25 = vmul.f32 1.442695, %v396_v15  ;;  %v399_v28 = vmin.f32 %v2562_v21, 0.0 }
 0x14c   :  { %2133 = vpow2.f32 %v932_v19  ;;  %v901_v27 = vsub.f32 0.0, %v2559_v20  ;;  %v1936_v29 = vpop.f32.mrb[6].mxu0  ;;  %v2569_v30 = vadd.f32 1e-06, %v836_v26  ;;  %v839_v31 = vmax.f32 %v701_v22, 0.0 }
 0x14d   :  { %2135 = vpow2.f32 %v930_v24  ;;  %v2016_v33 = vpop.f32.mrb[6].mxu1  ;;  %v233_v34 = vpop.f32.mrb[7].mxu0  ;;  %v436_v36 = vmul.f32 1.442695, %v399_v28  ;;  %v696_v37 = vadd.f32 %v2531_v49, %v695_v23  ;;  %vm365_vm2 = vcmp.gt.f32.partialorder %v2544_v0, 0.0 }
 0x14e   :  { %v936_v35 = vmul.f32 1.442695, %v901_v27  ;;  %2137 = vpow2.f32 %v430_v25  ;;  %v705_v38 = vpop.f32.mrb[7].mxu1  ;;  %v900_v39 = vsub.f32 0.0, %v2569_v30  ;;  %v2577_v40 = vadd.f32 1e-06, %v839_v31 }
 0x14f   :  { %v398_v41 = vmin.f32 %v2572_v32, 0.0  ;;  %v838_v42 = vmax.f32 %v696_v37, 0.0  ;;  %v2581_v43 = vadd.f32 %v1936_v29, %v2526_v48  ;;  %v711_v44 = vadd.f32 %v2016_v33, %v2531_v49 }
 0x150   :  { %2139 = vpow2.f32 %v936_v35  ;;  %v1939_v45 = vpop.f32.mrb[8].mxu0  ;;  %v934_v47 = vmul.f32 1.442695, %v900_v39  ;;  %v903_v50 = vsub.f32 0.0, %v2577_v40  ;;  %vm364_vm3 = vcmp.gt.f32.partialorder %v2550_v6, 0.0 }
 0x151   :  { %v2128_v46 = vpop.eup %2127  ;;  %2141 = vpow2.f32 %v436_v36  ;;  %v434_v52 = vmul.f32 1.442695, %v398_v41  ;;  %v2585_v53 = vpop.f32.mrb[8].mxu1  ;;  %v2588_v57 = vadd.f32 1e-06, %v838_v42  ;;  %v401_v58 = vmin.f32 %v2581_v43, 0.0 }
 0x152   :  { %v2130_v54 = vpop.eup %2129  ;;  %v1447_v56 = vadd.f32 -1.0, %v2128_v46  ;;  %v2591_v59 = vpop.f32.mrb[9].mxu0  ;;  %2143 = vpow2.f32 %v934_v47  ;;  %v940_v61 = vmul.f32 1.442695, %v903_v50  ;;  %v841_v62 = vmax.f32 %v711_v44, 0.0 }
 0x153   :  { %v1446_v60 = vadd.f32 -1.0, %v2130_v54  ;;  %v2593_v63 = vpop.f32.mrb[9].mxu1  ;;  %2145 = vpow2.f32 %v434_v52  ;;  %v902_v2 = vsub.f32 0.0, %v2588_v57  ;;  %v440_v4 = vmul.f32 1.442695, %v401_v58 }
 0x154   :  { %v523_v1 = vsel %vm363_vm0, %v2534_v51, %v1447_v56  ;;  %v2599_v5 = vpop.f32.mrb[10].mxu0  ;;  %2147 = vpow2.f32 %v940_v61  ;;  %v2604_v10 = vadd.f32 1e-06, %v841_v62  ;;  %v2607_v11 = vadd.f32 %v2526_v48, %v233_v34 }
 0x155   :  { %v2132_v7 = vpop.eup %2131  ;;  %v522_v9 = vsel %vm362_vm1, %v2538_v55, %v1446_v60  ;;  %v2609_v12 = vpop.f32.mrb[10].mxu1  ;;  %v938_v15 = vmul.f32 1.442695, %v902_v2  ;;  %2149 = vpow2.f32 %v440_v4  ;;  %v706_v16 = vadd.f32 %v2531_v49, %v705_v38 }
 0x156   :  { %v2611_v51 = vpop.f32.mrb[11].mxu0  ;;  %v2134_v13 = vpop.eup %2133  ;;  %v1449_v14 = vadd.f32 -1.0, %v2132_v7  ;;  %vm367_vm4 = vcmp.gt.f32.partialorder %v2562_v21, 0.0  ;;  %v905_v22 = vsub.f32 0.0, %v2604_v10  ;;  %vm366_vm5 = vcmp.gt.f32.partialorder %v2572_v32, 0.0 }
 0x157   :  { %v2614_v17 = vpop.f32.mrb[11].mxu1  ;;  %v2136_v18 = vpop.eup %2135  ;;  %v995_v55 = vmul.f32 %v2134_v13, %v523_v1  ;;  %v1187_v19 = vmul.f32 %v2134_v13, %v2546_v3  ;;  %2151 = vpow2.f32 %v938_v15  ;;  %v400_v31 = vmin.f32 %v2607_v11, 0.0 }
 0x158   :  { %v2138_v23 = vpop.eup %2137  ;;  %v994_v24 = vmul.f32 %v2136_v18, %v522_v9  ;;  %v1186_v25 = vmul.f32 %v2136_v18, %v2552_v8  ;;  %v525_v26 = vsel %vm365_vm2, %v2544_v0, %v1449_v14  ;;  %v2624_v27 = vpop.f32.mrb[12].mxu0  ;;  %v944_v3 = vmul.f32 1.442695, %v905_v22 }
 0x159   :  { %v1219_v28 = vmul.f32 %v2134_v13, %v1187_v19  ;;  %v1448_v29 = vadd.f32 -1.0, %v2138_v23  ;;  %v2627_v33 = vpop.f32.mrb[12].mxu1  ;;  %v2629_v34 = vpop.f32.mrb[13].mxu0  ;;  %v840_v37 = vmax.f32 %v706_v16, 0.0  ;;  %v2632_v0 = vadd.f32 %v1939_v45, %v2526_v48 }
 0x15a   :  { %v2140_v35 = vpop.eup %2139  ;;  %v1610_v8 = vpack.c.bf16 %v995_v55, %v994_v24  ;;  %v1218_v36 = vmul.f32 %v2136_v18, %v1186_v25  ;;  %v2634_v38 = vpop.f32.mrb[13].mxu1  ;;  %2153 = vpow2.f32 %v944_v3  ;;  %v438_v50 = vmul.f32 1.442695, %v400_v31 }
 0x15b   :  { %v2142_v39 = vpop.eup %2141  ;;  %v997_v41 = vmul.f32 %v2140_v35, %v525_v26  ;;  %v1189_v42 = vmul.f32 %v2140_v35, %v2559_v20  ;;  %v524_v44 = vsel %vm364_vm3, %v2550_v6, %v1448_v29  ;;  %v2640_v52 = vadd.f32 1e-06, %v840_v37 }
 0x15c   :  { %1611 = vst [vmem:[#allocation10] sm:$0xff] %v1610_v8   ;;  %v1690_v46 = vpack.c.bf16 %v1219_v28, %v1218_v36  ;;  %v1451_v47 = vadd.f32 -1.0, %v2142_v39  ;;  %v2642_v54 = vpop.f32.mrb[14].mxu0  ;;  %v2144_v45 = vpop.eup %2143  ;;  %vm369_vm6 = vcmp.gt.f32.partialorder %v2581_v43, 0.0  ;;  %v403_v58 = vmin.f32 %v2632_v0, 0.0 }
 0x15d   :  { %v1221_v56 = vmul.f32 %v2140_v35, %v1189_v42  ;;  %v721_v20 = vadd.f32 %v2585_v53, %v2531_v49  ;;  %v2648_v60 = vpop.f32.mrb[14].mxu1  ;;  %v2650_v6 = vpop.f32.mrb[15].mxu0  ;;  %v996_v62 = vmul.f32 %v2144_v45, %v524_v44  ;;  %v1188_v1 = vmul.f32 %v2144_v45, %v2569_v30 }
 0x15e   :  { %v2146_v61 = vpop.eup %2145  ;;  %1691 = vst [vmem:[#allocation11] sm:$0xff] %v1690_v46   ;;  %v527_v2 = vsel %vm367_vm4, %v2562_v21, %v1451_v47  ;;  %2155 = vpow2.f32 %v438_v50  ;;  %v2656_v4 = vpop.f32.mrb[15].mxu1  ;;  %v904_v53 = vsub.f32 0.0, %v2640_v52  ;;  %v444_v13 = vmul.f32 1.442695, %v403_v58 }
 0x15f   :  { %v2148_v7 = vpop.eup %2147  ;;  %v1450_v9 = vadd.f32 -1.0, %v2146_v61  ;;  %v843_v14 = vmax.f32 %v721_v20, 0.0  ;;  %v1615_v16 = vpack.c.bf16 %v997_v41, %v996_v62  ;;  %v1220_v18 = vmul.f32 %v2144_v45, %v1188_v1 }
 0x160   :  { %v2150_v15 = vpop.eup %2149  ;;  %v999_v55 = vmul.f32 %v2148_v7, %v527_v2  ;;  %v1191_v19 = vmul.f32 %v2148_v7, %v2577_v40  ;;  %v2660_v30 = vpop.f32.mrb[16].mxu0  ;;  %v942_v23 = vmul.f32 1.442695, %v904_v53  ;;  %2157 = vpow2.f32 %v444_v13 }
 0x161   :  { %v526_v21 = vsel %vm366_vm5, %v2572_v32, %v1450_v9  ;;  %v1453_v22 = vadd.f32 -1.0, %v2150_v15  ;;  %v2665_v24 = vpop.f32.mrb[16].mxu1  ;;  %v2667_v25 = vpop.f32.mrb[17].mxu0  ;;  %1767 = vst [vmem:[#allocation10 + $0x8] sm:$0xff] %v1615_v16   ;;  %v1695_v28 = vpack.c.bf16 %v1221_v56, %v1220_v18  ;;  %v2669_v3 = vadd.f32 1e-06, %v843_v14 }
 0x162   :  { %v2152_v26 = vpop.eup %2151  ;;  %v1223_v29 = vmul.f32 %v2148_v7, %v1191_v19  ;;  %v2673_v40 = vadd.f32 %v2526_v48, %v2591_v59  ;;  %v2675_v31 = vpop.f32.mrb[17].mxu1  ;;  %2159 = vpow2.f32 %v942_v23  ;;  %v716_v39 = vadd.f32 %v2531_v49, %v2593_v63 }
 0x163   :  { %v998_v32 = vmul.f32 %v2152_v26, %v526_v21  ;;  %v1190_v35 = vmul.f32 %v2152_v26, %v2588_v57  ;;  %v529_v8 = vsel %vm369_vm6, %v2581_v43, %v1453_v22  ;;  %1782 = vst [vmem:[#allocation11 + $0x8] sm:$0xff] %v1695_v28   ;;  %v907_v36 = vsub.f32 0.0, %v2669_v3 }
 0x164   :  { %v402_v37 = vmin.f32 %v2673_v40, 0.0  ;;  %v2685_v59 = vpop.f32.mrb[18].mxu0  ;;  %v2154_v41 = vpop.eup %2153  ;;  %v2689_v57 = vadd.f32 %v2599_v5, %v2526_v48  ;;  %v731_v43 = vadd.f32 %v2609_v12, %v2531_v49  ;;  %vm368_vm7 = vcmp.gt.f32.partialorder %v2607_v11, 0.0 }
 0x165   :  { %v1620_v42 = vpack.c.bf16 %v999_v55, %v998_v32  ;;  %v1222_v44 = vmul.f32 %v2152_v26, %v1190_v35  ;;  %v2693_v46 = vpop.f32.mrb[18].mxu1  ;;  %v2695_v47 = vpop.f32.mrb[19].mxu0  ;;  %v2697_v50 = vmul.f32 %v2154_v41, %v529_v8  ;;  %v948_v45 = vmul.f32 1.442695, %v907_v36 }
 0x166   :  { %v442_v63 = vmul.f32 1.442695, %v402_v37  ;;  %v2699_v56 = vpop.f32.mrb[19].mxu1  ;;  %v842_v20 = vmax.f32 %v716_v39, 0.0  ;;  %v405_v5 = vmin.f32 %v2689_v57, 0.0  ;;  %v1193_v12 = vmul.f32 %v2154_v41, %v2604_v10 }
 0x167   :  { %1768 = vst [vmem:[#allocation10 + $0x10] sm:$0xff] %v1620_v42   ;;  %v1700_v58 = vpack.c.bf16 %v1223_v29, %v1222_v44  ;;  %2161 = vpow2.f32 %v948_v45  ;;  %v845_v62 = vmax.f32 %v731_v43, 0.0  ;;  %v2706_v1 = vadd.f32 %v2526_v48, %v2611_v51 }
 0x168   :  { %v2156_v61 = vpop.eup %2155  ;;  %v2708_v2 = vpop.f32.mrb[20].mxu0  ;;  %2163 = vpow2.f32 %v442_v63  ;;  %v2710_v9 = vadd.f32 1e-06, %v842_v20  ;;  %v448_v53 = vmul.f32 1.442695, %v405_v5  ;;  %vm371_vm8 = vcmp.gt.f32.partialorder %v2632_v0, 0.0 }
 0x169   :  { %1783 = vst [vmem:[#allocation11 + $0x10] sm:$0xff] %v1700_v58   ;;  %v1452_v7 = vadd.f32 -1.0, %v2156_v61  ;;  %v2712_v13 = vpop.f32.mrb[20].mxu1  ;;  %v2715_v14 = vadd.f32 1e-06, %v845_v62  ;;  %v404_v10 = vmin.f32 %v2706_v1, 0.0  ;;  %v726_v51 = vadd.f32 %v2531_v49, %v2614_v17 }
 0x16a   :  { %v2720_v15 = vpop.f32.mrb[21].mxu0  ;;  %v2722_v16 = vpop.f32.mrb[21].mxu1  ;;  %v906_v19 = vsub.f32 0.0, %v2710_v9  ;;  %2165 = vpow2.f32 %v448_v53  ;;  %v2730_v21 = vadd.f32 %v2624_v27, %v2526_v48  ;;  %v1225_v32 = vmul.f32 %v2154_v41, %v1193_v12 }
 0x16b   :  { %v2158_v18 = vpop.eup %2157  ;;  %v528_v55 = vsel %vm368_vm7, %v2607_v11, %v1452_v7  ;;  %v909_v23 = vsub.f32 0.0, %v2715_v14  ;;  %v446_v17 = vmul.f32 1.442695, %v404_v10  ;;  %v844_v26 = vmax.f32 %v726_v51, 0.0 }
 0x16c   :  { %v1455_v22 = vadd.f32 -1.0, %v2158_v18  ;;  %v2733_v28 = vpop.f32.mrb[22].mxu0  ;;  %v2160_v29 = vpop.eup %2159  ;;  %v946_v35 = vmul.f32 1.442695, %v906_v19  ;;  %v407_v8 = vmin.f32 %v2730_v21, 0.0  ;;  %v741_v11 = vadd.f32 %v2627_v33, %v2531_v49 }
 0x16d   :  { %v2738_v36 = vpop.f32.mrb[22].mxu1  ;;  %v2740_v37 = vpop.f32.mrb[23].mxu0  ;;  %v1000_v27 = vmul.f32 %v2160_v29, %v528_v55  ;;  %v1192_v39 = vmul.f32 %v2160_v29, %v2640_v52  ;;  %vm370_vm9 = vcmp.gt.f32.partialorder %v2673_v40, 0.0  ;;  %v952_v41 = vmul.f32 1.442695, %v909_v23 }
 0x16e   :  { %v531_v42 = vsel %vm371_vm8, %v2632_v0, %v1455_v22  ;;  %v2747_v44 = vpop.f32.mrb[23].mxu1  ;;  %2167 = vpow2.f32 %v946_v35  ;;  %v2749_v43 = vadd.f32 1e-06, %v844_v26  ;;  %v452_v33 = vmul.f32 1.442695, %v407_v8 }
 0x16f   :  { %v847_v45 = vmax.f32 %v741_v11, 0.0  ;;  %v1625_v63 = vpack.c.bf16 %v2697_v50, %v1000_v27  ;;  %v1224_v58 = vmul.f32 %v2160_v29, %v1192_v39  ;;  %2169 = vpow2.f32 %v952_v41 }
 0x170   :  { %v2754_v52 = vadd.f32 %v2526_v48, %v2629_v34  ;;  %v2756_v20 = vpop.f32.mrb[24].mxu0  ;;  %2171 = vpow2.f32 %v446_v17  ;;  %v908_v0 = vsub.f32 0.0, %v2749_v43  ;;  %v736_v61 = vadd.f32 %v2531_v49, %v2634_v38 }
 0x171   :  { %v2759_v5 = vadd.f32 1e-06, %v847_v45  ;;  %v2763_v12 = vpop.f32.mrb[24].mxu1  ;;  %v2765_v62 = vpop.f32.mrb[25].mxu0  ;;  %1769 = vst [vmem:[#allocation10 + $0x18] sm:$0xff] %v1625_v63   ;;  %v1705_v7 = vpack.c.bf16 %v1225_v32, %v1224_v58  ;;  %vm373_vm10 = vcmp.gt.f32.partialorder %v2689_v57, 0.0  ;;  %2173 = vpow2.f32 %v452_v33 }
 0x172   :  { %v2162_v50 = vpop.eup %2161  ;;  %v406_v34 = vmin.f32 %v2754_v52, 0.0  ;;  %v2769_v53 = vpop.f32.mrb[25].mxu1  ;;  %v950_v55 = vmul.f32 1.442695, %v908_v0  ;;  %v846_v23 = vmax.f32 %v736_v61, 0.0  ;;  %v2775_v17 = vadd.f32 %v2642_v54, %v2526_v48 }
 0x173   :  { %v2164_v10 = vpop.eup %2163  ;;  %v1003_v51 = vmul.f32 %v2162_v50, %v531_v42  ;;  %v1195_v18 = vmul.f32 %v2162_v50, %v2669_v3  ;;  %v911_v38 = vsub.f32 0.0, %v2759_v5  ;;  %1784 = vst [vmem:[#allocation11 + $0x18] sm:$0xff] %v1705_v7   ;;  %vm372_vm11 = vcmp.gt.f32.partialorder %v2706_v1, 0.0 }
 0x174   :  { %v1454_v19 = vadd.f32 -1.0, %v2164_v10  ;;  %v450_v22 = vmul.f32 1.442695, %v406_v34  ;;  %v2777_v26 = vpop.f32.mrb[26].mxu0  ;;  %v2166_v29 = vpop.eup %2165  ;;  %2175 = vpow2.f32 %v950_v55  ;;  %v751_v3 = vadd.f32 %v2648_v60, %v2531_v49 }
 0x175   :  { %v956_v32 = vmul.f32 1.442695, %v911_v38  ;;  %v2782_v35 = vpop.f32.mrb[26].mxu1  ;;  %v2784_v8 = vpop.f32.mrb[27].mxu0  ;;  %v1457_v11 = vadd.f32 -1.0, %v2166_v29  ;;  %vm375_vm12 = vcmp.gt.f32.partialorder %v2730_v21, 0.0  ;;  %v1227_v41 = vmul.f32 %v2162_v50, %v1195_v18 }
 0x176   :  { %2177 = vpow2.f32 %v450_v22  ;;  %v2787_v54 = vadd.f32 1e-06, %v846_v23  ;;  %v2789_v27 = vpop.f32.mrb[27].mxu1  ;;  %v530_v39 = vsel %vm370_vm9, %v2673_v40, %v1454_v19  ;;  %v409_v42 = vmin.f32 %v2775_v17, 0.0 }
 0x177   :  { %2179 = vpow2.f32 %v956_v32  ;;  %v849_v60 = vmax.f32 %v751_v3, 0.0  ;;  %v533_v33 = vsel %vm373_vm10, %v2689_v57, %v1457_v11  ;;  %v2801_v63 = vadd.f32 %v2526_v48, %v2650_v6 }
 0x178   :  { %v910_v45 = vsub.f32 0.0, %v2787_v54  ;;  %v2803_v58 = vpop.f32.mrb[28].mxu0  ;;  %v2168_v0 = vpop.eup %2167  ;;  %v456_v61 = vmul.f32 1.442695, %v409_v42  ;;  %v746_v7 = vadd.f32 %v2531_v49, %v2656_v4  ;;  %v2811_v50 = vadd.f32 %v2660_v30, %v2526_v48 }
 0x179   :  { %v2805_v40 = vadd.f32 1e-06, %v849_v60  ;;  %v2813_v57 = vpop.f32.mrb[28].mxu1  ;;  %v2815_v34 = vpop.f32.mrb[29].mxu0  ;;  %v1002_v6 = vmul.f32 %v2168_v0, %v530_v39  ;;  %v1194_v18 = vmul.f32 %v2168_v0, %v2710_v9  ;;  %v761_v38 = vadd.f32 %v2665_v24, %v2531_v49 }
 0x17a   :  { %v2170_v10 = vpop.eup %2169  ;;  %v954_v55 = vmul.f32 1.442695, %v910_v45  ;;  %v2820_v19 = vpop.f32.mrb[29].mxu1  ;;  %vm374_vm13 = vcmp.gt.f32.partialorder %v2754_v52, 0.0  ;;  %2181 = vpow2.f32 %v456_v61  ;;  %v408_v42 = vmin.f32 %v2801_v63, 0.0 }
 0x17b   :  { %v2172_v22 = vpop.eup %2171  ;;  %v1005_v4 = vmul.f32 %v2170_v10, %v533_v33  ;;  %v1197_v23 = vmul.f32 %v2170_v10, %v2715_v14  ;;  %v913_v30 = vsub.f32 0.0, %v2805_v40  ;;  %v1630_v32 = vpack.c.bf16 %v1003_v51, %v1002_v6 }
 0x17c   :  { %v2174_v29 = vpop.eup %2173  ;;  %v1226_v3 = vmul.f32 %v2168_v0, %v1194_v18  ;;  %v1456_v11 = vadd.f32 -1.0, %v2172_v22  ;;  %2183 = vpow2.f32 %v954_v55  ;;  %v2825_v9 = vpop.f32.mrb[30].mxu0  ;;  %v848_v0 = vmax.f32 %v746_v7, 0.0 }
 0x17d   :  { %v1459_v39 = vadd.f32 -1.0, %v2174_v29  ;;  %v960_v24 = vmul.f32 1.442695, %v913_v30  ;;  %v2828_v60 = vpop.f32.mrb[30].mxu1  ;;  %v2830_v33 = vpop.f32.mrb[31].mxu0  ;;  %1770 = vst [vmem:[#allocation10 + $0x20] sm:$0xff] %v1630_v32   ;;  %v1229_v45 = vmul.f32 %v2170_v10, %v1197_v23 }
 0x17e   :  { %v1710_v14 = vpack.c.bf16 %v1227_v41, %v1226_v3  ;;  %v532_v51 = vsel %vm372_vm11, %v2706_v1, %v1456_v11  ;;  %v2835_v61 = vpop.f32.mrb[31].mxu1  ;;  %v2176_v6 = vpop.eup %2175  ;;  %v454_v55 = vmul.f32 1.442695, %v408_v42  ;;  %v411_v22 = vmin.f32 %v2811_v50, 0.0 }
 0x17f   :  { %v535_v18 = vsel %vm375_vm12, %v2730_v21, %v1459_v39  ;;  %2185 = vpow2.f32 %v960_v24  ;;  %v1004_v41 = vmul.f32 %v2176_v6, %v532_v51  ;;  %v1196_v10 = vmul.f32 %v2176_v6, %v2749_v43 }
 0x180   :  { %v2178_v30 = vpop.eup %2177  ;;  %1785 = vst [vmem:[#allocation11 + $0x20] sm:$0xff] %v1710_v14   ;;  %v2842_v23 = vadd.f32 1e-06, %v848_v0  ;;  %v851_v1 = vmax.f32 %v761_v38, 0.0  ;;  %2187 = vpow2.f32 %v454_v55  ;;  %v460_v32 = vmul.f32 1.442695, %v411_v22 }
 0x181   :  { %v2180_v7 = vpop.eup %2179  ;;  %v1458_v29 = vadd.f32 -1.0, %v2178_v30  ;;  %v2846_v3 = vadd.f32 %v2526_v48, %v2667_v25  ;;  %v1635_v21 = vpack.c.bf16 %v1005_v4, %v1004_v41  ;;  %v1228_v11 = vmul.f32 %v2176_v6, %v1196_v10 }
 0x182   :  { %v1007_v39 = vmul.f32 %v2180_v7, %v535_v18  ;;  %v1199_v24 = vmul.f32 %v2180_v7, %v2759_v5  ;;  %vm377_vm14 = vcmp.gt.f32.partialorder %v2775_v17, 0.0  ;;  %v912_v43 = vsub.f32 0.0, %v2842_v23 }
 0x183   :  { %2189 = vpow2.f32 %v460_v32  ;;  %v2851_v42 = vadd.f32 1e-06, %v851_v1  ;;  %1771 = vst [vmem:[#allocation10 + $0x28] sm:$0xff] %v1635_v21   ;;  %v1715_v38 = vpack.c.bf16 %v1229_v45, %v1228_v11  ;;  %v534_v25 = vsel %vm374_vm13, %v2754_v52, %v1458_v29 }
 0x184   :  { %v1231_v14 = vmul.f32 %v2180_v7, %v1199_v24  ;;  %v410_v4 = vmin.f32 %v2846_v3, 0.0  ;;  %v2182_v51 = vpop.eup %2181  ;;  %v958_v0 = vmul.f32 1.442695, %v912_v43  ;;  %v756_v6 = vadd.f32 %v2531_v49, %v2675_v31 }
 0x185   :  { %v915_v5 = vsub.f32 0.0, %v2851_v42  ;;  %v2862_v18 = vadd.f32 %v2685_v59, %v2526_v48  ;;  %1786 = vst [vmem:[#allocation11 + $0x28] sm:$0xff] %v1715_v38   ;;  %v1461_v45 = vadd.f32 -1.0, %v2182_v51  ;;  %v771_v52 = vadd.f32 %v2693_v46, %v2531_v49 }
 0x186   :  { %v2184_v55 = vpop.eup %2183  ;;  %v458_v22 = vmul.f32 1.442695, %v410_v4  ;;  %v2868_v30 = vadd.f32 %v2526_v48, %v2695_v47  ;;  %2191 = vpow2.f32 %v958_v0  ;;  %v850_v1 = vmax.f32 %v756_v6, 0.0 }
 0x187   :  { %v1006_v41 = vmul.f32 %v2184_v55, %v534_v25  ;;  %v1198_v10 = vmul.f32 %v2184_v55, %v2787_v54  ;;  %v964_v31 = vmul.f32 1.442695, %v915_v5  ;;  %v537_v59 = vsel %vm377_vm14, %v2775_v17, %v1461_v45 }
 0x188   :  { %2193 = vpow2.f32 %v458_v22  ;;  %v413_v46 = vmin.f32 %v2862_v18, 0.0  ;;  %v2876_v11 = vadd.f32 1e-06, %v850_v1  ;;  %v853_v54 = vmax.f32 %v771_v52, 0.0 }
 0x189   :  { %v2186_v7 = vpop.eup %2185  ;;  %v1640_v29 = vpack.c.bf16 %v1007_v39, %v1006_v41  ;;  %v1230_v32 = vmul.f32 %v2184_v55, %v1198_v10  ;;  %2195 = vpow2.f32 %v964_v31  ;;  %vm376_vm15 = vcmp.gt.f32.partialorder %v2801_v63, 0.0 }
 0x18a   :  { %v1009_v21 = vmul.f32 %v2186_v7, %v537_v59  ;;  %v1201_v47 = vmul.f32 %v2186_v7, %v2805_v40  ;;  %v2188_v24 = vpop.eup %2187  ;;  %v464_v17 = vmul.f32 1.442695, %v413_v46  ;;  %v412_v38 = vmin.f32 %v2868_v30, 0.0 }
 0x18b   :  { %1772 = vst [vmem:[#allocation10 + $0x30] sm:$0xff] %v1640_v29   ;;  %v1720_v43 = vpack.c.bf16 %v1231_v14, %v1230_v32  ;;  %v1460_v25 = vadd.f32 -1.0, %v2188_v24  ;;  %vm379_vm0 = vcmp.gt.f32.partialorder %v2811_v50, 0.0  ;;  %v914_v39 = vsub.f32 0.0, %v2876_v11 }
 0x18c   :  { %v2882_v4 = vadd.f32 1e-06, %v853_v54  ;;  %2197 = vpow2.f32 %v464_v17  ;;  %v462_v40 = vmul.f32 1.442695, %v412_v38  ;;  %v766_v0 = vadd.f32 %v2531_v49, %v2699_v56 }
 0x18d   :  { %v2190_v51 = vpop.eup %2189  ;;  %1787 = vst [vmem:[#allocation11 + $0x30] sm:$0xff] %v1720_v43   ;;  %v2888_v14 = vadd.f32 %v2708_v2, %v2526_v48  ;;  %v1233_v5 = vmul.f32 %v2186_v7, %v1201_v47  ;;  %v962_v55 = vmul.f32 1.442695, %v914_v39  ;;  %v536_v22 = vsel %vm376_vm15, %v2801_v63, %v1460_v25 }
 0x18e   :  { %v1463_v6 = vadd.f32 -1.0, %v2190_v51  ;;  %v917_v45 = vsub.f32 0.0, %v2882_v4  ;;  %2199 = vpow2.f32 %v462_v40  ;;  %v852_v52 = vmax.f32 %v766_v0, 0.0 }
 0x18f   :  { %v415_v41 = vmin.f32 %v2888_v14, 0.0  ;;  %2201 = vpow2.f32 %v962_v55  ;;  %v781_v10 = vadd.f32 %v2712_v13, %v2531_v49  ;;  %v2904_v63 = vadd.f32 %v2526_v48, %v2720_v15 }
 0x190   :  { %v539_v56 = vsel %vm379_vm0, %v2811_v50, %v1463_v6  ;;  %v968_v2 = vmul.f32 1.442695, %v917_v45  ;;  %v2192_v31 = vpop.eup %2191  ;;  %v2900_v59 = vadd.f32 1e-06, %v852_v52  ;;  %v776_v7 = vadd.f32 %v2531_v49, %v2722_v16 }
 0x191   :  { %v468_v1 = vmul.f32 1.442695, %v415_v41  ;;  %v1008_v32 = vmul.f32 %v2192_v31, %v536_v22  ;;  %v1200_v50 = vmul.f32 %v2192_v31, %v2842_v23  ;;  %v855_v46 = vmax.f32 %v781_v10, 0.0 }
 0x192   :  { %v2194_v29 = vpop.eup %2193  ;;  %2203 = vpow2.f32 %v968_v2  ;;  %vm378_vm1 = vcmp.gt.f32.partialorder %v2846_v3, 0.0  ;;  %v916_v54 = vsub.f32 0.0, %v2900_v59  ;;  %vm381_vm2 = vcmp.gt.f32.partialorder %v2862_v18, 0.0 }
 0x193   :  { %v2196_v47 = vpop.eup %2195  ;;  %v1462_v13 = vadd.f32 -1.0, %v2194_v29  ;;  %2205 = vpow2.f32 %v468_v1  ;;  %v1645_v24 = vpack.c.bf16 %v1009_v21, %v1008_v32  ;;  %v1232_v43 = vmul.f32 %v2192_v31, %v1200_v50 }
 0x194   :  { %v1011_v15 = vmul.f32 %v2196_v47, %v539_v56  ;;  %v1203_v17 = vmul.f32 %v2196_v47, %v2851_v42  ;;  %v966_v16 = vmul.f32 1.442695, %v916_v54  ;;  %v2913_v38 = vadd.f32 1e-06, %v855_v46 }
 0x195   :  { %v414_v23 = vmin.f32 %v2904_v63, 0.0  ;;  %1773 = vst [vmem:[#allocation10 + $0x38] sm:$0xff] %v1645_v24   ;;  %v1725_v25 = vpack.c.bf16 %v1233_v5, %v1232_v43  ;;  %v538_v39 = vsel %vm378_vm1, %v2846_v3, %v1462_v13  ;;  %v854_v51 = vmax.f32 %v776_v7, 0.0 }
 0x196   :  { %v2919_v40 = vadd.f32 %v2733_v28, %v2526_v48  ;;  %v2198_v21 = vpop.eup %2197  ;;  %2207 = vpow2.f32 %v966_v16  ;;  %v919_v42 = vsub.f32 0.0, %v2913_v38  ;;  %v791_v6 = vadd.f32 %v2738_v36, %v2531_v49 }
 0x197   :  { %v466_v0 = vmul.f32 1.442695, %v414_v23  ;;  %1788 = vst [vmem:[#allocation11 + $0x38] sm:$0xff] %v1725_v25   ;;  %v1235_v55 = vmul.f32 %v2196_v47, %v1203_v17  ;;  %v1465_v45 = vadd.f32 -1.0, %v2198_v21  ;;  %v2924_v22 = vadd.f32 1e-06, %v854_v51 }
 0x198   :  { %v417_v3 = vmin.f32 %v2919_v40, 0.0  ;;  %v2200_v5 = vpop.eup %2199  ;;  %v972_v52 = vmul.f32 1.442695, %v919_v42  ;;  %v857_v28 = vmax.f32 %v791_v6, 0.0  ;;  %v2929_v41 = vadd.f32 %v2526_v48, %v2740_v37 }
 0x199   :  { %2209 = vpow2.f32 %v466_v0  ;;  %v2202_v56 = vpop.eup %2201  ;;  %v541_v36 = vsel %vm381_vm2, %v2862_v18, %v1465_v45  ;;  %v1464_v2 = vadd.f32 -1.0, %v2200_v5  ;;  %v918_v10 = vsub.f32 0.0, %v2924_v22 }
 0x19a   :  { %v472_v31 = vmul.f32 1.442695, %v417_v3  ;;  %v1010_v1 = vmul.f32 %v2202_v56, %v538_v39  ;;  %v1202_v7 = vmul.f32 %v2202_v56, %v2876_v11  ;;  %2211 = vpow2.f32 %v972_v52 }
 0x19b   :  { %v2936_v29 = vadd.f32 1e-06, %v857_v28  ;;  %vm380_vm3 = vcmp.gt.f32.partialorder %v2868_v30, 0.0  ;;  %vm383_vm4 = vcmp.gt.f32.partialorder %v2888_v14, 0.0  ;;  %v970_v37 = vmul.f32 1.442695, %v918_v10 }
 0x19c   :  { %v2204_v32 = vpop.eup %2203  ;;  %2213 = vpow2.f32 %v472_v31  ;;  %v1650_v46 = vpack.c.bf16 %v1011_v15, %v1010_v1  ;;  %v1234_v18 = vmul.f32 %v2202_v56, %v1202_v7  ;;  %v540_v54 = vsel %vm380_vm3, %v2868_v30, %v1464_v2  ;;  %v2971_v28 = vld [vmem:[%s3107_s5] ss:$0 sm:$0xff] }
 0x19d   :  { %v2206_v50 = vpop.eup %2205  ;;  %v1013_v47 = vmul.f32 %v2204_v32, %v541_v36  ;;  %v1205_v13 = vmul.f32 %v2204_v32, %v2882_v4  ;;  %2215 = vpow2.f32 %v970_v37  ;;  %v921_v11 = vsub.f32 0.0, %v2936_v29 }
 0x19e   :  { %v416_v24 = vmin.f32 %v2929_v41, 0.0  ;;  %1774 = vst [vmem:[#allocation10 + $0x40] sm:$0xff] %v1650_v46   ;;  %v1730_v43 = vpack.c.bf16 %v1235_v55, %v1234_v18  ;;  %v1467_v17 = vadd.f32 -1.0, %v2206_v50  ;;  %v786_v16 = vadd.f32 %v2531_v49, %v2747_v44  ;;  %v2984_v46 = vld [vmem:[%s3106_s4] ss:$0 sm:$0xff]  ;;  %s2405_s4 = smov [#allocation10]  }
 0x19f   :  { %v2948_v15 = vadd.f32 %v2756_v20, %v2526_v48  ;;  %vm382_vm5 = vcmp.gt.f32.partialorder %v2904_v63, 0.0  ;;  %v976_v4 = vmul.f32 1.442695, %v921_v11  ;;  %v801_v30 = vadd.f32 %v2763_v12, %v2531_v49  ;;  %s1415_s8 = sshll.u32 %s2405_s4, 4  ;;  %s1416_s8 = int_to_ptr.vmem [resolvable:$true] %s1415_s8 }
 0x1a0   :  { %v470_v23 = vmul.f32 1.442695, %v416_v24  ;;  %v2208_v25 = vpop.eup %2207  ;;  %1789 = vst [vmem:[#allocation11 + $0x40] sm:$0xff] %v1730_v43   ;;  %v1237_v39 = vmul.f32 %v2204_v32, %v1205_v13  ;;  %v856_v51 = vmax.f32 %v786_v16, 0.0  ;;  %v2956_v44 = vadd.f32 %v2526_v48, %v2765_v62  ;;  %s2345_s11 = scalar_lea.vmem %s1416_s8, 2048  ;;  %p2350_p5 = scmp.lt.s32.totalorder %s1416_s8, %s1416_s8 }
 0x1a1   :  { %v419_v21 = vmin.f32 %v2948_v15, 0.0  ;;  %v1012_v42 = vmul.f32 %v2208_v25, %v540_v54  ;;  %v1204_v20 = vmul.f32 %v2208_v25, %v2900_v59  ;;  %2217 = vpow2.f32 %v976_v4  ;;  %p2346_p4 = scmp.ne.s32.totalorder %s1416_s8, %s2345_s11  ;;  %p2351_p6 = scmp.lt.s32.totalorder %s2345_s11, %s2345_s11 }
 0x1a2   :  { %v859_v0 = vmax.f32 %v801_v30, 0.0  ;;  %v543_v49 = vsel %vm383_vm4, %v2888_v14, %v1467_v17  ;;  %2219 = vpow2.f32 %v470_v23  ;;  %v2962_v12 = vadd.f32 1e-06, %v856_v51 }
 0x1a3   :  { %v2210_v6 = vpop.eup %2209  ;;  %v476_v55 = vmul.f32 1.442695, %v419_v21  ;;  %v1655_v45 = vpack.c.bf16 %v1013_v47, %v1012_v42  ;;  %v1236_v3 = vmul.f32 %v2208_v25, %v1204_v20  ;;  %v418_v59 = vmin.f32 %v2956_v44, 0.0  ;;  %p2352_p7 = por %p2351_p6, %p2350_p5 }
 0x1a4   :  { %v1466_v5 = vadd.f32 -1.0, %v2210_v6  ;;  %v2964_v52 = vadd.f32 1e-06, %v859_v0  ;;  %v2212_v48 = vpop.eup %2211  ;;  %v920_v62 = vsub.f32 0.0, %v2962_v12  ;;  %v796_v14 = vadd.f32 %v2971_v28, %v2769_v53 }
 0x1a5   :  { %2221 = vpow2.f32 %v476_v55  ;;  %1775 = vst [vmem:[#allocation10 + $0x48] sm:$0xff] %v1655_v45   ;;  %v1735_v36 = vpack.c.bf16 %v1237_v39, %v1236_v3  ;;  %v1015_v2 = vmul.f32 %v2212_v48, %v543_v49  ;;  %v1207_v10 = vmul.f32 %v2212_v48, %v2913_v38  ;;  %p2353_p8 = pnand %p2352_p7, %p2346_p4 }
 0x1a6   :  { %v2214_v56 = vpop.eup %2213  ;;  %v542_v31 = vsel %vm382_vm5, %v2904_v63, %v1466_v5  ;;  %v974_v7 = vmul.f32 1.442695, %v920_v62  ;;  %v923_v32 = vsub.f32 0.0, %v2964_v52  ;;  %v474_v37 = vmul.f32 1.442695, %v418_v59 }
 0x1a7   :  { %v1469_v1 = vadd.f32 -1.0, %v2214_v56  ;;  %v2216_v50 = vpop.eup %2215  ;;  %1790 = vst [vmem:[#allocation11 + $0x48] sm:$0xff] %v1735_v36   ;;  %vm385_vm6 = vcmp.gt.f32.partialorder %v2919_v40, 0.0  ;;  %v858_v53 = vmax.f32 %v796_v14, 0.0  ;;  %v2988_v38 = vadd.f32 %v2984_v46, %v2777_v26 }
 0x1a8   :  { %v811_v63 = vadd.f32 %v2971_v28, %v2782_v35  ;;  %v1239_v18 = vmul.f32 %v2212_v48, %v1207_v10  ;;  %v1014_v47 = vmul.f32 %v2216_v50, %v542_v31  ;;  %v1206_v13 = vmul.f32 %v2216_v50, %v2924_v22 }
 0x1a9   :  { %2223 = vpow2.f32 %v974_v7  ;;  %v545_v54 = vsel %vm385_vm6, %v2919_v40, %v1469_v1  ;;  %v980_v11 = vmul.f32 1.442695, %v923_v32  ;;  %v2994_v24 = vadd.f32 1e-06, %v858_v53 }
 0x1aa   :  { %2225 = vpow2.f32 %v474_v37  ;;  %v1660_v43 = vpack.c.bf16 %v1015_v2, %v1014_v47  ;;  %v1238_v17 = vmul.f32 %v2216_v50, %v1206_v13  ;;  %v421_v16 = vmin.f32 %v2988_v38, 0.0 }
 0x1ab   :  { %v861_v26 = vmax.f32 %v811_v63, 0.0  ;;  %v2218_v4 = vpop.eup %2217  ;;  %2227 = vpow2.f32 %v980_v11  ;;  %v922_v35 = vsub.f32 0.0, %v2994_v24  ;;  %v3000_v23 = vadd.f32 %v2984_v46, %v2784_v8 }
 0x1ac   :  { %v806_v40 = vadd.f32 %v2971_v28, %v2789_v27  ;;  %v2220_v22 = vpop.eup %2219  ;;  %1776 = vst [vmem:[#allocation10 + $0x50] sm:$0xff] %v1660_v43   ;;  %v1740_v30 = vpack.c.bf16 %v1239_v18, %v1238_v17  ;;  %v1017_v25 = vmul.f32 %v2218_v4, %v545_v54  ;;  %vm384_vm7 = vcmp.gt.f32.partialorder %v2929_v41, 0.0 }
 0x1ad   :  { %v480_v39 = vmul.f32 1.442695, %v421_v16  ;;  %v1209_v51 = vmul.f32 %v2218_v4, %v2936_v29  ;;  %v1468_v21 = vadd.f32 -1.0, %v2220_v22  ;;  %v978_v42 = vmul.f32 1.442695, %v922_v35 }
 0x1ae   :  { %v3006_v20 = vadd.f32 1e-06, %v861_v26  ;;  %1791 = vst [vmem:[#allocation11 + $0x50] sm:$0xff] %v1740_v30   ;;  %vm387_vm8 = vcmp.gt.f32.partialorder %v2948_v15, 0.0  ;;  %v420_v8 = vmin.f32 %v3000_v23, 0.0  ;;  %v860_v27 = vmax.f32 %v806_v40, 0.0 }
 0x1af   :  { %v2222_v0 = vpop.eup %2221  ;;  %2229 = vpow2.f32 %v480_v39  ;;  %v544_v6 = vsel %vm384_vm7, %v2929_v41, %v1468_v21  ;;  %v3016_v3 = vadd.f32 %v2984_v46, %v2803_v58  ;;  %v821_v5 = vadd.f32 %v2971_v28, %v2813_v57 }
 0x1b0   :  { %v1471_v49 = vadd.f32 -1.0, %v2222_v0  ;;  %2231 = vpow2.f32 %v978_v42  ;;  %v925_v55 = vsub.f32 0.0, %v3006_v20  ;;  %v478_v45 = vmul.f32 1.442695, %v420_v8 }
 0x1b1   :  { %v3012_v29 = vadd.f32 1e-06, %v860_v27  ;;  %v1241_v48 = vmul.f32 %v2218_v4, %v1209_v51  ;;  %vm386_vm9 = vcmp.gt.f32.partialorder %v2956_v44, 0.0  ;;  %v3023_v41 = vadd.f32 %v2984_v46, %v2815_v34 }
 0x1b2   :  { %v984_v62 = vmul.f32 1.442695, %v925_v55  ;;  %v547_v14 = vsel %vm387_vm8, %v2948_v15, %v1471_v49  ;;  %2233 = vpow2.f32 %v478_v45  ;;  %v423_v56 = vmin.f32 %v3016_v3, 0.0 }
 0x1b3   :  { %v2224_v59 = vpop.eup %2223  ;;  %v924_v58 = vsub.f32 0.0, %v3012_v29  ;;  %v863_v10 = vmax.f32 %v821_v5, 0.0  ;;  %v816_v7 = vadd.f32 %v2971_v28, %v2820_v19  ;;  %v422_v53 = vmin.f32 %v3023_v41, 0.0 }
 0x1b4   :  { %v2226_v36 = vpop.eup %2225  ;;  %v1016_v57 = vmul.f32 %v2224_v59, %v544_v6  ;;  %v1208_v2 = vmul.f32 %v2224_v59, %v2962_v12  ;;  %2235 = vpow2.f32 %v984_v62  ;;  %v484_v34 = vmul.f32 1.442695, %v423_v56 }
 0x1b5   :  { %v1470_v31 = vadd.f32 -1.0, %v2226_v36  ;;  %v982_v1 = vmul.f32 1.442695, %v924_v58  ;;  %v2228_v32 = vpop.eup %2227  ;;  %v3033_v50 = vadd.f32 1e-06, %v863_v10  ;;  %vm389_vm10 = vcmp.gt.f32.partialorder %v2988_v38, 0.0 }
 0x1b6   :  { %v1665_v37 = vpack.c.bf16 %v1017_v25, %v1016_v57  ;;  %v1240_v15 = vmul.f32 %v2224_v59, %v1208_v2  ;;  %v1019_v63 = vmul.f32 %v2228_v32, %v547_v14  ;;  %v1211_v18 = vmul.f32 %v2228_v32, %v2964_v52 }
 0x1b7   :  { %v546_v12 = vsel %vm386_vm9, %v2956_v44, %v1470_v31  ;;  %2237 = vpow2.f32 %v982_v1  ;;  %v927_v19 = vsub.f32 0.0, %v3033_v50  ;;  %v482_v13 = vmul.f32 1.442695, %v422_v53 }
 0x1b8   :  { %1777 = vst [vmem:[#allocation10 + $0x58] sm:$0xff] %v1665_v37   ;;  %v1745_v47 = vpack.c.bf16 %v1241_v48, %v1240_v15  ;;  %2239 = vpow2.f32 %v484_v34  ;;  %v862_v11 = vmax.f32 %v816_v7, 0.0  ;;  %v3044_v43 = vadd.f32 %v2984_v46, %v2825_v9 }
 0x1b9   :  { %v2230_v54 = vpop.eup %2229  ;;  %v831_v52 = vadd.f32 %v2971_v28, %v2828_v60  ;;  %v988_v16 = vmul.f32 1.442695, %v927_v19  ;;  %2241 = vpow2.f32 %v482_v13  ;;  %v3050_v26 = vadd.f32 %v2984_v46, %v2830_v33 }
 0x1ba   :  { %v2232_v17 = vpop.eup %2231  ;;  %1792 = vst [vmem:[#allocation11 + $0x58] sm:$0xff] %v1745_v47   ;;  %v1473_v44 = vadd.f32 -1.0, %v2230_v54  ;;  %v1243_v4 = vmul.f32 %v2228_v32, %v1211_v18  ;;  %v894_v22 = vadd.f32 1e-06, %v862_v11  ;;  %v425_v30 = vmin.f32 %v3044_v43, 0.0 }
 0x1bb   :  { %v1018_v35 = vmul.f32 %v2232_v17, %v546_v12  ;;  %v1210_v40 = vmul.f32 %v2232_v17, %v2994_v24  ;;  %2243 = vpow2.f32 %v988_v16  ;;  %v865_v60 = vmax.f32 %v831_v52, 0.0 }
 0x1bc   :  { %v549_v9 = vsel %vm389_vm10, %v2988_v38, %v1473_v44  ;;  %v2234_v25 = vpop.eup %2233  ;;  %vm388_vm11 = vcmp.gt.f32.partialorder %v3000_v23, 0.0  ;;  %v926_v21 = vsub.f32 0.0, %v894_v22  ;;  %v488_v46 = vmul.f32 1.442695, %v425_v30 }
 0x1bd   :  { %v1670_v39 = vpack.c.bf16 %v1019_v63, %v1018_v35  ;;  %v1242_v51 = vmul.f32 %v2232_v17, %v1210_v40  ;;  %v1472_v33 = vadd.f32 -1.0, %v2234_v25  ;;  %v897_v0 = vadd.f32 1e-06, %v865_v60 }
 0x1be   :  { %v2236_v42 = vpop.eup %2235  ;;  %v424_v8 = vmin.f32 %v3050_v26, 0.0  ;;  %v986_v6 = vmul.f32 1.442695, %v926_v21  ;;  %2245 = vpow2.f32 %v488_v46  ;;  %v826_v62 = vadd.f32 %v2971_v28, %v2835_v61 }
 0x1bf   :  { %1778 = vst [vmem:[#allocation10 + $0x60] sm:$0xff] %v1670_v39   ;;  %v1750_v24 = vpack.c.bf16 %v1243_v4, %v1242_v51  ;;  %v1021_v27 = vmul.f32 %v2236_v42, %v549_v9  ;;  %v1213_v38 = vmul.f32 %v2236_v42, %v3006_v20  ;;  %v548_v49 = vsel %vm388_vm11, %v3000_v23, %v1472_v33 }
 0x1c0   :  { %v929_v55 = vsub.f32 0.0, %v897_v0  ;;  %v486_v45 = vmul.f32 1.442695, %v424_v8  ;;  %2247 = vpow2.f32 %v986_v6  ;;  %v864_v36 = vmax.f32 %v826_v62, 0.0 }
 0x1c1   :  { %v2238_v5 = vpop.eup %2237  ;;  %1793 = vst [vmem:[#allocation11 + $0x60] sm:$0xff] %v1750_v24   ;;  %v1245_v48 = vmul.f32 %v2236_v42, %v1213_v38  ;;  %vm391_vm12 = vcmp.gt.f32.partialorder %v3016_v3, 0.0  ;;  %vm390_vm13 = vcmp.gt.f32.partialorder %v3023_v41, 0.0  ;;  %vm393_vm14 = vcmp.gt.f32.partialorder %v3044_v43, 0.0 }
 0x1c2   :  { %v2240_v59 = vpop.eup %2239  ;;  %v1020_v14 = vmul.f32 %v2238_v5, %v548_v49  ;;  %v1212_v58 = vmul.f32 %v2238_v5, %v3012_v29  ;;  %v992_v56 = vmul.f32 1.442695, %v929_v55  ;;  %2249 = vpow2.f32 %v486_v45 }
 0x1c3   :  { %v1475_v20 = vadd.f32 -1.0, %v2240_v59  ;;  %v2242_v57 = vpop.eup %2241  ;;  %v896_v1 = vadd.f32 1e-06, %v864_v36  ;;  %vm392_vm15 = vcmp.gt.f32.partialorder %v3050_v26, 0.0 }
 0x1c4   :  { %v1675_v23 = vpack.c.bf16 %v1021_v27, %v1020_v14  ;;  %v1244_v2 = vmul.f32 %v2238_v5, %v1212_v58  ;;  %2251 = vpow2.f32 %v992_v56  ;;  %v1474_v31 = vadd.f32 -1.0, %v2242_v57 }
 0x1c5   :  { %v551_v10 = vsel %vm391_vm12, %v3016_v3, %v1475_v20  ;;  %v2244_v34 = vpop.eup %2243  ;;  %v928_v7 = vsub.f32 0.0, %v896_v1 }
 0x1c6   :  { %1779 = vst [vmem:[#allocation10 + $0x68] sm:$0xff] %v1675_v23   ;;  %v1755_v61 = vpack.c.bf16 %v1245_v48, %v1244_v2  ;;  %v1023_v28 = vmul.f32 %v2244_v34, %v551_v10  ;;  %v1215_v29 = vmul.f32 %v2244_v34, %v3033_v50  ;;  %v550_v32 = vsel %vm390_vm13, %v3023_v41, %v1474_v31 }
 0x1c7   :  { %v990_v37 = vmul.f32 1.442695, %v928_v7 }
 0x1c8   :  { %1794 = vst [vmem:[#allocation11 + $0x68] sm:$0xff] %v1755_v61   ;;  %v2246_v15 = vpop.eup %2245  ;;  %v1247_v18 = vmul.f32 %v2244_v34, %v1215_v29 }
 0x1c9   :  { %v1477_v63 = vadd.f32 -1.0, %v2246_v15  ;;  %2253 = vpow2.f32 %v990_v37 }
 0x1ca   :  { %v2248_v53 = vpop.eup %2247 }
 0x1cb   :  { %v1022_v12 = vmul.f32 %v2248_v53, %v550_v32  ;;  %v1214_v47 = vmul.f32 %v2248_v53, %v894_v22  ;;  %v553_v19 = vsel %vm393_vm14, %v3044_v43, %v1477_v63 }
 0x1cc   :  { %v2250_v3 = vpop.eup %2249 }
 0x1cd   :  { %v1680_v54 = vpack.c.bf16 %v1023_v28, %v1022_v12  ;;  %v1246_v50 = vmul.f32 %v2248_v53, %v1214_v47  ;;  %v1476_v52 = vadd.f32 -1.0, %v2250_v3 }
 0x1ce   :  { %v2252_v13 = vpop.eup %2251 }
 0x1cf   :  { %v1025_v11 = vmul.f32 %v2252_v13, %v553_v19  ;;  %1780 = vst [vmem:[#allocation10 + $0x70] sm:$0xff] %v1680_v54   ;;  %v1760_v41 = vpack.c.bf16 %v1247_v18, %v1246_v50  ;;  %v1217_v17 = vmul.f32 %v2252_v13, %v897_v0  ;;  %v552_v44 = vsel %vm392_vm15, %v3050_v26, %v1476_v52 }
 0x1d1   :  { %1795 = vst [vmem:[#allocation11 + $0x70] sm:$0xff] %v1760_v41   ;;  %v1249_v4 = vmul.f32 %v2252_v13, %v1217_v17 }
 0x1d3   :  { %v2254_v16 = vpop.eup %2253 }
 0x1d4   :  { %v1024_v35 = vmul.f32 %v2254_v16, %v552_v44  ;;  %v1216_v40 = vmul.f32 %v2254_v16, %v896_v1 }
 0x1d6   :  { %v1685_v43 = vpack.c.bf16 %v1025_v11, %v1024_v35  ;;  %v1248_v22 = vmul.f32 %v2254_v16, %v1216_v40 }
 0x1d8   :  { %1781 = vst [vmem:[#allocation10 + $0x78] sm:$0xff] %v1685_v43   ;;  %v1765_v9 = vpack.c.bf16 %v1249_v4, %v1248_v22 }
 0x1d9   :  { %2356 = shalt.err (!%p2353_p8)
}
 0x1da   :  { %s2357_s16 = scalar_lea.hbm %s3108_s6, 2048 }
 0x1db   :  { %p2358_p9 = scmp.ne.s32.totalorder %s3108_s6, %s2357_s16  ;;  %p2361_p10 = scmp.lt.u32.totalorder %s2357_s16, %s3108_s6 }
 0x1dd   :  { %p2363_p11 = pnand %p2361_p10, %p2358_p9 }
 0x1df   :  { %2366 = shalt.err (!%p2363_p11)
}
 0x1e0   :  { %s2407_s19 = smov 64   ;;  %s2408_s20 = smov 4   ;;  %1796 = vst [vmem:[#allocation11 + $0x78] sm:$0xff] %v1765_v9  }
 0x1e1   :  { %1421 = dma.vmem_to_hbm [thread:$0]  %s1416_s8, 2048, %s3108_s6, [#allocation4], %s2407_s19, %s2407_s19, %s2408_s20  }
 0x1e2   :  { %s2367_s23 = scalar_lea.vmem %s3071_s10, 2048  ;;  %p2372_p13 = scmp.lt.s32.totalorder %s3071_s10, %s3071_s10 }
 0x1e3   :  { %p2368_p12 = scmp.ne.s32.totalorder %s3071_s10, %s2367_s23  ;;  %p2373_p0 = scmp.lt.s32.totalorder %s2367_s23, %s2367_s23 }
 0x1e5   :  { %p2374_p1 = por %p2373_p0, %p2372_p13 }
 0x1e7   :  { %p2375_p2 = pnand %p2374_p1, %p2368_p12 }
 0x1e9   :  { %2378 = shalt.err (!%p2375_p2)
}
 0x1ea   :  { %s2379_s2 = scalar_lea.hbm %s3109_s7, 2048 }
 0x1eb   :  { %p2380_p3 = scmp.ne.s32.totalorder %s3109_s7, %s2379_s2  ;;  %p2383_p4 = scmp.lt.u32.totalorder %s2379_s2, %s3109_s7 }
 0x1ed   :  { %p2385_p5 = pnand %p2383_p4, %p2380_p3 }
 0x1ef   :  { %2388 = shalt.err (!%p2385_p5)
}
 0x1f0   :  { %1433 = dma.vmem_to_hbm [thread:$0]  %s3071_s10, 2048, %s3109_s7, [#allocation12], %s2407_s19, %s2407_s19, %s2408_s20  }
 0x1f1   :  { %2395 = dma.done.wait [#allocation4], 2048  }
 0x1f2   :  { %2396 = vsyncadd [#allocation4], 4294965248 }
 0x1f3   :  { %2397 = dma.done.wait [#allocation12], 2048  }
 0x1f4   :  { %2398 = vsyncadd [#allocation12], 4294965248 }
 0x1f5   :  { %1440 = vsyncpa [#allocation3], 1 }
 0x1f6   :  { %1441 = vsyncpa [#allocation6], 1 }
 0x1f7   :  { %1442 = vsyncpa [#allocation9], 1 }
 0x1f8   :  { %1443 = vsyncpa [#allocation4], 1 }
 0x1f9   :  { %1444 = vsyncpa [#allocation12], 1 }

</bundles_post_ra>
